<compile_context>
chip_gen: v7x
topology: tpu7x:2x2x1
jax: 0.10.0
libtpu: 0.0.40
codegen_flags: <defaults>
</compile_context>

<pallas_src>
import functools

import jax
import jax.numpy as jnp
import numpy as np
from jax.experimental import pallas as pl
from jax.experimental.pallas import tpu as pltpu

EPS = 0.001  # matches torch.nn.BatchNorm1d(eps=0.001)


def fcn_kernel(block_meta, L, x_ref, pool_ref, *refs):
    """Bt samples per grid step, stacked on the lane axis.

    block_meta: static tuple of (kernel_size K, in_channels C) per conv block.
    L:          static per-sample sequence length (samples occupy L consecutive lanes).
    x_ref:      (C0p, Bt*L) input block (first-block channels zero-padded to C0p).
    pool_ref:   (Bt*L, Bt) block-diagonal 1/L pooling matrix (mean over time as matmul).
    refs = (w0, b0, w1, b1, ..., out_ref); w_i is the BN-folded conv weight reshaped to
    (F_out, K*C) (tap-major, channel-minor), b_i the BN-folded bias (F_out, 1).
    """
    out_ref = refs[-1]
    param_refs = refs[:-1]

    h = x_ref[...]                               # (C0p, Bt*L) f32, time+batch on lanes
    BtL = h.shape[-1]

    # Within-sample lane index, hoisted once (JAX does not CSE broadcast_in_dim).
    lane_in = jax.lax.broadcasted_iota(jnp.int32, (1, BtL), 1) % L

    for i, (K, C) in enumerate(block_meta):
        w = param_refs[2 * i][...]               # (Fo, K*C)  BN + bias folded in
        b = param_refs[2 * i + 1][...]           # (Fo, 1)
        pad_left = (K - 1) // 2                  # torch padding='same' (stride 1)

        # im2col: K lane-rolled (and edge-masked) copies of h stacked on sublanes.
        # Mask uses the within-sample index so rolls never leak across sample borders.
        pieces = []
        for k in range(K):
            d = k - pad_left                     # static tap offset
            if d == 0:
                pieces.append(h)
                continue
            shifted = pltpu.roll(h, shift=(-d) % BtL, axis=1)   # XLU rotate, lane-aligned
            if d < 0:
                piece = jnp.where(lane_in >= -d, shifted, 0.0)
            else:
                piece = jnp.where(lane_in < L - d, shifted, 0.0)
            pieces.append(piece)
        xcol = jnp.concatenate(pieces, axis=0)                  # (K*C, Bt*L), tap-major

        # Conv1d + (folded) BatchNorm + bias + ReLU: one MXU matmul per block.
        y = jnp.dot(w, xcol, preferred_element_type=jnp.float32) + b
        h = jnp.maximum(y, 0.0)                                 # (Fo, Bt*L)

    # Global average pooling over time as a lane-dense pooling matmul:
    # (F_last, Bt*L) x (Bt*L, Bt) -> (F_last, Bt).
    out_ref[0] = jnp.dot(h, pool_ref[...], preferred_element_type=jnp.float32)


def _round_up(v, m):
    return ((v + m - 1) // m) * m


def _fold_params(params):
    """Fold eval-mode BatchNorm and the conv bias into the conv weights.

    Pads the first block's input channels to a multiple of 8 (sublane alignment).
    Returns (flat_param_list, block_meta, padded_c0).  Weights laid out as (F_out, K*C),
    tap-major / channel-minor, matching the kernel's im2col stacking.
    """
    flat, meta = [], []
    c0 = params[0]["w"].shape[1]
    c0p = max(8, _round_up(c0, 8))
    in_ch = c0p
    for i, p in enumerate(params):
        f, c, ks = p["w"].shape
        scale = (p["gamma"] * jax.lax.rsqrt(p["var"] + EPS)).astype(jnp.float32)
        w_f = p["w"].astype(jnp.float32) * scale[:, None, None]          # (F, C, K)
        b_f = (p["b"] - p["mean"]).astype(jnp.float32) * scale + p["beta"]
        if i == 0 and c < c0p:                                           # zero-pad C0 -> 8
            w_f = jnp.pad(w_f, ((0, 0), (0, c0p - c), (0, 0)))
            c = c0p
        assert c == in_ch, "channel mismatch between consecutive blocks"
        w2d = jnp.transpose(w_f, (0, 2, 1)).reshape(f, ks * c)           # (F, K*C)
        flat.extend([w2d, b_f.reshape(f, 1).astype(jnp.float32)])
        meta.append((ks, c))
        in_ch = f
    return flat, tuple(meta), c0p


def fcn_forward(x, params, bt=8):
    """x: (N, 1, L) float32 (PyTorch NCW).  Returns (N, filters[-1]) float32."""
    N, C0, L = x.shape
    assert max(p["w"].shape[2] for p in params) - 1 < L, "kernel longer than sequence"
    flat, meta, c0p = _fold_params(params)
    f_last = params[-1]["w"].shape[0]

    bt = max(1, min(bt, N))
    num_steps = int(pl.cdiv(N, bt))
    n_pad = num_steps * bt

    # (N, C0, L) -> (C0p, n_pad*L): batch + time flattened on lanes, channels padded to 8.
    xt = jnp.transpose(x.astype(jnp.float32), (1, 0, 2))                 # (C0, N, L)
    xt = jnp.pad(xt, ((0, c0p - C0), (0, n_pad - N), (0, 0)))
    x2d = xt.reshape(c0p, n_pad * L)

    # Block-diagonal pooling matrix: P[s*L + l, s] = 1/L.
    pool = jnp.repeat(jnp.eye(bt, dtype=jnp.float32), L, axis=0) / float(L)  # (bt*L, bt)

    in_specs = [pl.BlockSpec((c0p, bt * L), lambda n: (0, n)),
                pl.BlockSpec((bt * L, bt), lambda n: (0, 0))]
    in_specs += [pl.BlockSpec(a.shape, lambda n: (0, 0)) for a in flat]

    out = pl.pallas_call(
        functools.partial(fcn_kernel, meta, L),
        grid=(num_steps,),
        out_shape=jax.ShapeDtypeStruct((num_steps, f_last, bt), jnp.float32),
        in_specs=in_specs,
        out_specs=pl.BlockSpec((1, f_last, bt), lambda n: (n, 0, 0)),
        compiler_params=pltpu.CompilerParams(
            dimension_semantics=("parallel",)),
    )(x2d, pool, *flat)

    # Free metadata/plumbing reshape in the wrapper; drop batch padding.
    out = jnp.transpose(out, (0, 2, 1)).reshape(n_pad, f_last)
    return out[:N]


def fcn_reference(x, params):
    """Pure-JAX reference mirroring the PyTorch forward (eval-mode BN)."""
    h = x.astype(jnp.float32)
    for p in params:
        h = jax.lax.conv_general_dilated(
            h, p["w"].astype(jnp.float32), window_strides=(1,), padding="SAME",
            dimension_numbers=("NCH", "OIH", "NCH"))
        h = h + p["b"][None, :, None]
        inv = jax.lax.rsqrt(p["var"] + EPS)
        h = (h - p["mean"][None, :, None]) * (inv * p["gamma"])[None, :, None] \
            + p["beta"][None, :, None]
        h = jnp.maximum(h, 0.0)
    return jnp.mean(h, axis=-1)


def make_params(key, filters, kernel_sizes):
    params = []
    in_ch = 1
    for f, ks in zip(filters, kernel_sizes):
        key, k1, k2, k3, k4, k5, k6 = jax.random.split(key, 7)
        params.append({
            "w": 0.3 * jax.random.normal(k1, (f, in_ch, ks), jnp.float32),
            "b": 0.1 * jax.random.normal(k2, (f,), jnp.float32),
            "gamma": 1.0 + 0.1 * jax.random.normal(k3, (f,), jnp.float32),
            "beta": 0.1 * jax.random.normal(k4, (f,), jnp.float32),
            "mean": 0.1 * jax.random.normal(k5, (f,), jnp.float32),
            "var": jax.random.uniform(k6, (f,), jnp.float32, 0.5, 1.5),
        })
        in_ch = f
    return params


if __name__ == "__main__":
    filters = [8, 16, 8]
    kernel_sizes = [5, 3, 3]
    batch, length = 16, 128   # bt=8 -> 2 parallel grid steps (keeps both v7x TCs busy)

    key = jax.random.PRNGKey(0)
    key, kx = jax.random.split(key)
    x = jax.random.normal(kx, (batch, 1, length), jnp.float32)
    params = make_params(key, filters, kernel_sizes)

    out = jax.block_until_ready(fcn_forward(x, params, bt=8))
    ref = jax.block_until_ready(fcn_reference(x, params))

    assert out.shape == (batch, filters[-1])
    assert np.allclose(np.asarray(out), np.asarray(ref), atol=1e-4, rtol=1e-4), (
        "Pallas output does not match reference")
    print("KERNEL_OK")
</pallas_src>

<mosaic_0001>
module attributes {stable_mosaic.version = 11 : i64} {
  func.func @fcn_kernel(%arg0: i32, %arg1: memref<8x1024xf32, #tpu.memory_space<vmem>>, %arg2: memref<1024x8xf32, #tpu.memory_space<vmem>>, %arg3: memref<8x40xf32, #tpu.memory_space<vmem>>, %arg4: memref<8x1xf32, #tpu.memory_space<vmem>>, %arg5: memref<16x24xf32, #tpu.memory_space<vmem>>, %arg6: memref<16x1xf32, #tpu.memory_space<vmem>>, %arg7: memref<8x48xf32, #tpu.memory_space<vmem>>, %arg8: memref<8x1xf32, #tpu.memory_space<vmem>>, %arg9: memref<1x8x8xf32, #tpu.memory_space<vmem>>) attributes {dimension_semantics = [#tpu.dimension_semantics<parallel>], iteration_bounds = array<i64: 2>, scalar_prefetch = 0 : i64, scratch_operands = 0 : i64, tpu.core_type = #tpu.core_type<tc>, window_params = [{transform_indices = @transform_0, window_bounds = array<i64: 8, 1024>}, {pipeline_mode = #tpu.pipeline_mode<synchronous>, transform_indices = @transform_1, window_bounds = array<i64: 1024, 8>}, {pipeline_mode = #tpu.pipeline_mode<synchronous>, transform_indices = @transform_2, window_bounds = array<i64: 8, 40>}, {pipeline_mode = #tpu.pipeline_mode<synchronous>, transform_indices = @transform_3, window_bounds = array<i64: 8, 1>}, {pipeline_mode = #tpu.pipeline_mode<synchronous>, transform_indices = @transform_4, window_bounds = array<i64: 16, 24>}, {pipeline_mode = #tpu.pipeline_mode<synchronous>, transform_indices = @transform_5, window_bounds = array<i64: 16, 1>}, {pipeline_mode = #tpu.pipeline_mode<synchronous>, transform_indices = @transform_6, window_bounds = array<i64: 8, 48>}, {pipeline_mode = #tpu.pipeline_mode<synchronous>, transform_indices = @transform_7, window_bounds = array<i64: 8, 1>}, {transform_indices = @transform_8, window_bounds = array<i64: 1, 8, 8>}]} {
    %c0 = arith.constant 0 : index
    %c0_0 = arith.constant 0 : index
    %0 = vector.load %arg1[%c0, %c0_0] : memref<8x1024xf32, #tpu.memory_space<vmem>>, vector<8x1024xf32>
    %1 = tpu.iota {dimensions = array<i32: 1>} : vector<1x1024xi32>
    %c128_i32 = arith.constant 128 : i32
    %c0_i32 = arith.constant 0 : i32
    %2 = arith.cmpi eq, %c128_i32, %c0_i32 : i32
    %c1_i32 = arith.constant 1 : i32
    %3 = arith.select %2, %c1_i32, %c128_i32 : i32
    %4 = vector.broadcast %3 : i32 to vector<1x1024xi32>
    %5 = arith.remsi %1, %4 : vector<1x1024xi32>
    %c0_i32_1 = arith.constant 0 : i32
    %6 = vector.broadcast %c0_i32_1 : i32 to vector<1x1024xi32>
    %7 = arith.cmpi ne, %5, %6 : vector<1x1024xi32>
    %c0_i32_2 = arith.constant 0 : i32
    %8 = vector.broadcast %c0_i32_2 : i32 to vector<1x1024xi32>
    %9 = arith.cmpi slt, %5, %8 : vector<1x1024xi32>
    %c0_i32_3 = arith.constant 0 : i32
    %10 = arith.cmpi slt, %3, %c0_i32_3 : i32
    %11 = vector.broadcast %10 : i1 to vector<1x1024xi1>
    %12 = vector.broadcast %11 : vector<1x1024xi1> to vector<1x1024xi1>
    %13 = arith.xori %9, %12 : vector<1x1024xi1>
    %14 = arith.andi %13, %7 : vector<1x1024xi1>
    %15 = vector.broadcast %3 : i32 to vector<1x1024xi32>
    %16 = arith.addi %5, %15 : vector<1x1024xi32>
    %17 = arith.select %14, %16, %5 : vector<1x1024xi1>, vector<1x1024xi32>
    %c0_4 = arith.constant 0 : index
    %c0_5 = arith.constant 0 : index
    %18 = vector.load %arg3[%c0_4, %c0_5] : memref<8x40xf32, #tpu.memory_space<vmem>>, vector<8x40xf32>
    %c0_6 = arith.constant 0 : index
    %c0_7 = arith.constant 0 : index
    %19 = vector.load %arg4[%c0_6, %c0_7] : memref<8x1xf32, #tpu.memory_space<vmem>>, vector<8x1xf32>
    %c2_i32 = arith.constant 2 : i32
    %20 = tpu.dynamic_rotate %0 by %c2_i32 dim 1 : vector<8x1024xf32>, i32 -> vector<8x1024xf32>
    %c2_i32_8 = arith.constant 2 : i32
    %21 = vector.broadcast %c2_i32_8 : i32 to vector<1x1024xi32>
    %22 = arith.cmpi sge, %17, %21 : vector<1x1024xi32>
    %cst = arith.constant 0.000000e+00 : f32
    %23 = vector.shape_cast %22 : vector<1x1024xi1> to vector<1x1024xi1>
    %24 = vector.broadcast %23 : vector<1x1024xi1> to vector<8x1024xi1>
    %25 = vector.broadcast %cst : f32 to vector<8x1024xf32>
    %26 = arith.select %24, %20, %25 : vector<8x1024xi1>, vector<8x1024xf32>
    %c1_i32_9 = arith.constant 1 : i32
    %27 = tpu.dynamic_rotate %0 by %c1_i32_9 dim 1 : vector<8x1024xf32>, i32 -> vector<8x1024xf32>
    %c1_i32_10 = arith.constant 1 : i32
    %28 = vector.broadcast %c1_i32_10 : i32 to vector<1x1024xi32>
    %29 = arith.cmpi sge, %17, %28 : vector<1x1024xi32>
    %cst_11 = arith.constant 0.000000e+00 : f32
    %30 = vector.shape_cast %29 : vector<1x1024xi1> to vector<1x1024xi1>
    %31 = vector.broadcast %30 : vector<1x1024xi1> to vector<8x1024xi1>
    %32 = vector.broadcast %cst_11 : f32 to vector<8x1024xf32>
    %33 = arith.select %31, %27, %32 : vector<8x1024xi1>, vector<8x1024xf32>
    %c1023_i32 = arith.constant 1023 : i32
    %34 = tpu.dynamic_rotate %0 by %c1023_i32 dim 1 : vector<8x1024xf32>, i32 -> vector<8x1024xf32>
    %c127_i32 = arith.constant 127 : i32
    %35 = vector.broadcast %c127_i32 : i32 to vector<1x1024xi32>
    %36 = arith.cmpi slt, %17, %35 : vector<1x1024xi32>
    %cst_12 = arith.constant 0.000000e+00 : f32
    %37 = vector.shape_cast %36 : vector<1x1024xi1> to vector<1x1024xi1>
    %38 = vector.broadcast %37 : vector<1x1024xi1> to vector<8x1024xi1>
    %39 = vector.broadcast %cst_12 : f32 to vector<8x1024xf32>
    %40 = arith.select %38, %34, %39 : vector<8x1024xi1>, vector<8x1024xf32>
    %c1022_i32 = arith.constant 1022 : i32
    %41 = tpu.dynamic_rotate %0 by %c1022_i32 dim 1 : vector<8x1024xf32>, i32 -> vector<8x1024xf32>
    %c126_i32 = arith.constant 126 : i32
    %42 = vector.broadcast %c126_i32 : i32 to vector<1x1024xi32>
    %43 = arith.cmpi slt, %17, %42 : vector<1x1024xi32>
    %cst_13 = arith.constant 0.000000e+00 : f32
    %44 = vector.shape_cast %43 : vector<1x1024xi1> to vector<1x1024xi1>
    %45 = vector.broadcast %44 : vector<1x1024xi1> to vector<8x1024xi1>
    %46 = vector.broadcast %cst_13 : f32 to vector<8x1024xf32>
    %47 = arith.select %45, %41, %46 : vector<8x1024xi1>, vector<8x1024xf32>
    %48 = tpu.concatenate %26, %33, %0, %40, %47 in 0 : vector<8x1024xf32>, vector<8x1024xf32>, vector<8x1024xf32>, vector<8x1024xf32>, vector<8x1024xf32> -> vector<40x1024xf32>
    %cst_14 = arith.constant dense<0.000000e+00> : vector<8x1024xf32>
    %49 = tpu.matmul %18, %48, %cst_14 {dimension_numbers = #tpu.dot_dimension_numbers<[1], [0], [0], [1], [0, 0, 1, 1], [], []>} : vector<8x40xf32>, vector<40x1024xf32>, vector<8x1024xf32> -> vector<8x1024xf32>
    %50 = vector.broadcast %19 : vector<8x1xf32> to vector<8x1024xf32>
    %51 = arith.addf %49, %50 : vector<8x1024xf32>
    %cst_15 = arith.constant 0.000000e+00 : f32
    %52 = vector.broadcast %cst_15 : f32 to vector<8x1024xf32>
    %53 = arith.maximumf %51, %52 : vector<8x1024xf32>
    %c0_16 = arith.constant 0 : index
    %c0_17 = arith.constant 0 : index
    %54 = vector.load %arg5[%c0_16, %c0_17] : memref<16x24xf32, #tpu.memory_space<vmem>>, vector<16x24xf32>
    %c0_18 = arith.constant 0 : index
    %c0_19 = arith.constant 0 : index
    %55 = vector.load %arg6[%c0_18, %c0_19] : memref<16x1xf32, #tpu.memory_space<vmem>>, vector<16x1xf32>
    %c1_i32_20 = arith.constant 1 : i32
    %56 = tpu.dynamic_rotate %53 by %c1_i32_20 dim 1 : vector<8x1024xf32>, i32 -> vector<8x1024xf32>
    %c1_i32_21 = arith.constant 1 : i32
    %57 = vector.broadcast %c1_i32_21 : i32 to vector<1x1024xi32>
    %58 = arith.cmpi sge, %17, %57 : vector<1x1024xi32>
    %cst_22 = arith.constant 0.000000e+00 : f32
    %59 = vector.shape_cast %58 : vector<1x1024xi1> to vector<1x1024xi1>
    %60 = vector.broadcast %59 : vector<1x1024xi1> to vector<8x1024xi1>
    %61 = vector.broadcast %cst_22 : f32 to vector<8x1024xf32>
    %62 = arith.select %60, %56, %61 : vector<8x1024xi1>, vector<8x1024xf32>
    %c1023_i32_23 = arith.constant 1023 : i32
    %63 = tpu.dynamic_rotate %53 by %c1023_i32_23 dim 1 : vector<8x1024xf32>, i32 -> vector<8x1024xf32>
    %c127_i32_24 = arith.constant 127 : i32
    %64 = vector.broadcast %c127_i32_24 : i32 to vector<1x1024xi32>
    %65 = arith.cmpi slt, %17, %64 : vector<1x1024xi32>
    %cst_25 = arith.constant 0.000000e+00 : f32
    %66 = vector.shape_cast %65 : vector<1x1024xi1> to vector<1x1024xi1>
    %67 = vector.broadcast %66 : vector<1x1024xi1> to vector<8x1024xi1>
    %68 = vector.broadcast %cst_25 : f32 to vector<8x1024xf32>
    %69 = arith.select %67, %63, %68 : vector<8x1024xi1>, vector<8x1024xf32>
    %70 = tpu.concatenate %62, %53, %69 in 0 : vector<8x1024xf32>, vector<8x1024xf32>, vector<8x1024xf32> -> vector<24x1024xf32>
    %cst_26 = arith.constant dense<0.000000e+00> : vector<16x1024xf32>
    %71 = tpu.matmul %54, %70, %cst_26 {dimension_numbers = #tpu.dot_dimension_numbers<[1], [0], [0], [1], [0, 0, 1, 1], [], []>} : vector<16x24xf32>, vector<24x1024xf32>, vector<16x1024xf32> -> vector<16x1024xf32>
    %72 = vector.broadcast %55 : vector<16x1xf32> to vector<16x1024xf32>
    %73 = arith.addf %71, %72 : vector<16x1024xf32>
    %cst_27 = arith.constant 0.000000e+00 : f32
    %74 = vector.broadcast %cst_27 : f32 to vector<16x1024xf32>
    %75 = arith.maximumf %73, %74 : vector<16x1024xf32>
    %c0_28 = arith.constant 0 : index
    %c0_29 = arith.constant 0 : index
    %76 = vector.load %arg7[%c0_28, %c0_29] : memref<8x48xf32, #tpu.memory_space<vmem>>, vector<8x48xf32>
    %c0_30 = arith.constant 0 : index
    %c0_31 = arith.constant 0 : index
    %77 = vector.load %arg8[%c0_30, %c0_31] : memref<8x1xf32, #tpu.memory_space<vmem>>, vector<8x1xf32>
    %c1_i32_32 = arith.constant 1 : i32
    %78 = tpu.dynamic_rotate %75 by %c1_i32_32 dim 1 : vector<16x1024xf32>, i32 -> vector<16x1024xf32>
    %c1_i32_33 = arith.constant 1 : i32
    %79 = vector.broadcast %c1_i32_33 : i32 to vector<1x1024xi32>
    %80 = arith.cmpi sge, %17, %79 : vector<1x1024xi32>
    %cst_34 = arith.constant 0.000000e+00 : f32
    %81 = vector.shape_cast %80 : vector<1x1024xi1> to vector<1x1024xi1>
    %82 = vector.broadcast %81 : vector<1x1024xi1> to vector<16x1024xi1>
    %83 = vector.broadcast %cst_34 : f32 to vector<16x1024xf32>
    %84 = arith.select %82, %78, %83 : vector<16x1024xi1>, vector<16x1024xf32>
    %c1023_i32_35 = arith.constant 1023 : i32
    %85 = tpu.dynamic_rotate %75 by %c1023_i32_35 dim 1 : vector<16x1024xf32>, i32 -> vector<16x1024xf32>
    %c127_i32_36 = arith.constant 127 : i32
    %86 = vector.broadcast %c127_i32_36 : i32 to vector<1x1024xi32>
    %87 = arith.cmpi slt, %17, %86 : vector<1x1024xi32>
    %cst_37 = arith.constant 0.000000e+00 : f32
    %88 = vector.shape_cast %87 : vector<1x1024xi1> to vector<1x1024xi1>
    %89 = vector.broadcast %88 : vector<1x1024xi1> to vector<16x1024xi1>
    %90 = vector.broadcast %cst_37 : f32 to vector<16x1024xf32>
    %91 = arith.select %89, %85, %90 : vector<16x1024xi1>, vector<16x1024xf32>
    %92 = tpu.concatenate %84, %75, %91 in 0 : vector<16x1024xf32>, vector<16x1024xf32>, vector<16x1024xf32> -> vector<48x1024xf32>
    %cst_38 = arith.constant dense<0.000000e+00> : vector<8x1024xf32>
    %93 = tpu.matmul %76, %92, %cst_38 {dimension_numbers = #tpu.dot_dimension_numbers<[1], [0], [0], [1], [0, 0, 1, 1], [], []>} : vector<8x48xf32>, vector<48x1024xf32>, vector<8x1024xf32> -> vector<8x1024xf32>
    %94 = vector.broadcast %77 : vector<8x1xf32> to vector<8x1024xf32>
    %95 = arith.addf %93, %94 : vector<8x1024xf32>
    %cst_39 = arith.constant 0.000000e+00 : f32
    %96 = vector.broadcast %cst_39 : f32 to vector<8x1024xf32>
    %97 = arith.maximumf %95, %96 : vector<8x1024xf32>
    %c0_40 = arith.constant 0 : index
    %c0_41 = arith.constant 0 : index
    %98 = vector.load %arg2[%c0_40, %c0_41] : memref<1024x8xf32, #tpu.memory_space<vmem>>, vector<1024x8xf32>
    %cst_42 = arith.constant dense<0.000000e+00> : vector<8x8xf32>
    %99 = tpu.matmul %97, %98, %cst_42 {dimension_numbers = #tpu.dot_dimension_numbers<[1], [0], [0], [1], [0, 0, 1, 1], [], []>} : vector<8x1024xf32>, vector<1024x8xf32>, vector<8x8xf32> -> vector<8x8xf32>
    %c0_43 = arith.constant 0 : index
    %c0_44 = arith.constant 0 : index
    %c0_45 = arith.constant 0 : index
    %100 = vector.load %arg9[%c0_43, %c0_44, %c0_45] : memref<1x8x8xf32, #tpu.memory_space<vmem>>, vector<1x8x8xf32>
    %101 = vector.shape_cast %100 : vector<1x8x8xf32> to vector<8x8xf32>
    %102 = vector.shape_cast %99 : vector<8x8xf32> to vector<1x8x8xf32>
    tpu.vector_store %arg9[%c0_43, %c0_44, %c0_45], %102 {strides = array<i32>} : memref<1x8x8xf32, #tpu.memory_space<vmem>>, vector<1x8x8xf32>,
    return
  }
  func.func @transform_0(%arg0: i32) -> (i32, i32) {
    %c0_i32 = arith.constant 0 : i32
    %c0_i32_0 = arith.constant 0 : i32
    return %c0_i32, %arg0 : i32, i32
  }
  func.func @transform_1(%arg0: i32) -> (i32, i32) {
    %c0_i32 = arith.constant 0 : i32
    %c0_i32_0 = arith.constant 0 : i32
    %c0_i32_1 = arith.constant 0 : i32
    return %c0_i32, %c0_i32_0 : i32, i32
  }
  func.func @transform_2(%arg0: i32) -> (i32, i32) {
    %c0_i32 = arith.constant 0 : i32
    %c0_i32_0 = arith.constant 0 : i32
    %c0_i32_1 = arith.constant 0 : i32
    return %c0_i32, %c0_i32_0 : i32, i32
  }
  func.func @transform_3(%arg0: i32) -> (i32, i32) {
    %c0_i32 = arith.constant 0 : i32
    %c0_i32_0 = arith.constant 0 : i32
    %c0_i32_1 = arith.constant 0 : i32
    return %c0_i32, %c0_i32_0 : i32, i32
  }
  func.func @transform_4(%arg0: i32) -> (i32, i32) {
    %c0_i32 = arith.constant 0 : i32
    %c0_i32_0 = arith.constant 0 : i32
    %c0_i32_1 = arith.constant 0 : i32
    return %c0_i32, %c0_i32_0 : i32, i32
  }
  func.func @transform_5(%arg0: i32) -> (i32, i32) {
    %c0_i32 = arith.constant 0 : i32
    %c0_i32_0 = arith.constant 0 : i32
    %c0_i32_1 = arith.constant 0 : i32
    return %c0_i32, %c0_i32_0 : i32, i32
  }
  func.func @transform_6(%arg0: i32) -> (i32, i32) {
    %c0_i32 = arith.constant 0 : i32
    %c0_i32_0 = arith.constant 0 : i32
    %c0_i32_1 = arith.constant 0 : i32
    return %c0_i32, %c0_i32_0 : i32, i32
  }
  func.func @transform_7(%arg0: i32) -> (i32, i32) {
    %c0_i32 = arith.constant 0 : i32
    %c0_i32_0 = arith.constant 0 : i32
    %c0_i32_1 = arith.constant 0 : i32
    return %c0_i32, %c0_i32_0 : i32, i32
  }
  func.func @transform_8(%arg0: i32) -> (i32, i32, i32) {
    %c0_i32 = arith.constant 0 : i32
    %c0_i32_0 = arith.constant 0 : i32
    %c0_i32_1 = arith.constant 0 : i32
    return %arg0, %c0_i32, %c0_i32_0 : i32, i32, i32
  }
}

</mosaic_0001>

<bundles_post_ra>
// kernel: tpu_custom_call.1
= control target key start
LH: loop header
LB: loop body
LE: loop exit
PB: predicated region body
PF: predicated region fallthrough
CT: control target
= control target key end

     0   :  { %13 = vsyncpa [#allocation3], 0  ;;  %s4294_s0 = inlined_call_operand.vmem [shape: f32[8,2048], index: 0, kind: input, shape index: {}]   ;;  %s4295_s1 = inlined_call_operand.vmem [shape: f32[1024,8], index: 1, kind: input, shape index: {}]   ;;  %s4296_s2 = inlined_call_operand.vmem [shape: f32[8,40], index: 2, kind: input, shape index: {}]   ;;  %s4297_s3 = inlined_call_operand.vmem [shape: f32[8,1], index: 3, kind: input, shape index: {}]   ;;  %s4298_s4 = inlined_call_operand.vmem [shape: f32[16,24], index: 4, kind: input, shape index: {}]   ;;  %s4299_s5 = inlined_call_operand.vmem [shape: f32[16,1], index: 5, kind: input, shape index: {}]   ;;  %s4300_s6 = inlined_call_operand.vmem [shape: f32[8,48], index: 6, kind: input, shape index: {}]   ;;  %s4301_s7 = inlined_call_operand.vmem [shape: f32[8,1], index: 7, kind: input, shape index: {}]   ;;  %s4302_s8 = inlined_call_operand.hbm [shape: f32[2,8,8], index: 8, kind: output, shape index: {}]  }
   0x1   :  { %15 = vsyncpa [#allocation3 + $0x1], 0  ;;  %s3099_s27 = smov 0   ;;  %s3101_s28 = smov 0  }
   0x2   :  { %s3103_s29 = smov 0   ;;  %s3105_s30 = smov 0  }
   0x3 LB: > { %s3120_s9 = sadd.s32 4294967295, %s3044_s30   ;;  %s2273_s10 = sadd.s32 4294967294, %s3044_s30   ;;  %s3044_s30 = sphi %s3105_s30, %s4355_s30   ;;  %s3040_s29 = sphi %s3103_s29, %s4354_s29   ;;  %s3036_s28 = sphi %s3101_s28, %s4353_s28   ;;  %s3032_s27 = sphi %s3099_s27, %s4352_s27  }
   0x4   : > { %s3124_s11 = sadd.s32 1, %s3044_s30   ;;  %s201_s12 = sadd.s32 1, %s3040_s29 }
   0x5   : > { %s198_s13 = ssub.s32 %s3044_s30, %s3124_s11  ;;  %p211_p0 = scmp.ne.s32.totalorder %s3040_s29, %s3036_s28 }
   0x6   : > { %p199_p1 = scmp.eq.s32.totalorder %s198_s13, 0  ;;  %p212_p2 = scmp.eq.s32.totalorder %s3120_s9, 1 }
   0x7   : > { %p217_p3 = scmp.ne.s32.totalorder %s3036_s28, %s3032_s27  ;;  %p218_p4 = scmp.eq.s32.totalorder %s2273_s10, 1 }
   0x8   : > { %s3135_s14 = scalar_select %p199_p1, %s3040_s29, %s201_s12  }
   0x9   : > { %p3137_p5 = por %p212_p2, %p211_p0  ;;  %p3141_p6 = por %p218_p4, %p217_p3 }
   0xa   : > { %p2276_p7 = scmp.ge.s32.totalorder %s3044_s30, 1  ;;  %p266_p8 = scmp.lt.s32.totalorder %s3044_s30, 3 }
   0xc   : > { %p267_p9 = pnand %p2276_p7, %p266_p8 }
   0xd   : > { %s2278_s17 = sshll.u32 (!%p267_p9), %s3120_s9, 3  ;;  %s3046_s22 = smov (!%p267_p9), 2   ;;  %v3049_v14 = vmov (!%p267_p9), 0.0   ;;  %v3051_v15 = vmov (!%p267_p9), 0   ;;  %v420_v16 = vld [vmem:[%s4297_s3] sm:$0xff] (!%p267_p9)  ;;  %v314_v17 = vlaneseq (!%p267_p9) }
   0xe   : > { %270 = sbr.rel (%p267_p9) target bundleno = 1374 (0x55e), region = 52  ;;  %p301_p10 = scmp.lt.s32.totalorder (!%p267_p9), %s2278_s17, 15  ;;  %722 = vmatprep.mubr.f32.mxu0 (!%p267_p9), %v3049_v14  ;;  %793 = vmatprep.mubr.f32.mxu1 (!%p267_p9), %v3049_v14 }
   0xf   : > { %s3047_s23 = smov (!%p267_p9), 1   ;;  %s3048_s24 = smov (!%p267_p9), 127   ;;  %2901 = vset.pattern.permute.xlu0 (!%p267_p9), %v3051_v15  ;;  %2885 = vset.pattern.permute.xlu1 (!%p267_p9), %v3051_v15  ;;  %v3203_v18 = vand.u32 (!%p267_p9), 127, %v314_v17 }
  0x10   : > { %s3050_s25 = smov (!%p267_p9), 126   ;;  %s297_s10 = sand.u32 (!%p267_p9), 1, %s3036_s28  }
  0x11   : > { %v316_v19 = vadd.s32 (!%p267_p9), 128, %v3203_v18  ;;  %v318_v21 = vadd.s32 (!%p267_p9), 384, %v3203_v18  ;;  %v317_v24 = vadd.s32 (!%p267_p9), 256, %v3203_v18  ;;  %vm437_vm0 = vcmp.lt.s32.totalorder (!%p267_p9), %v3203_v18, 2  ;;  %s2277_s12 = sshll.u32 (!%p267_p9), %s297_s10, 3  ;;  %s2201_s20 = scalar_lea.sflag (!%p267_p9), [#allocation3], %s297_s10 }
  0x12   : > { %vm494_vm1 = vcmp.lt.s32.totalorder (!%p267_p9), %v3203_v18, 1  ;;  %vm551_vm4 = vcmp.lt.s32.totalorder (!%p267_p9), %v3203_v18, 127  ;;  %vm446_vm5 = vcmp.ge.s32.totalorder (!%p267_p9), %v3203_v18, 2  ;;  %vm4304_vm6 = vcmp.ge.s32.totalorder (!%p267_p9), %v3203_v18, 1 }
  0x13   : > { %v3209_v23 = vand.u32 (!%p267_p9), 127, %v316_v19  ;;  %v3214_v28 = vand.u32 (!%p267_p9), 127, %v318_v21  ;;  %v3220_v32 = vand.u32 (!%p267_p9), 127, %v317_v24  ;;  %vm3257_vm12 = vmpackc.low (!%p267_p9), %vm4304_vm6, %vm446_vm5  ;;  %v320_v60 = vadd.s32 (!%p267_p9), 640, %v3203_v18 }
  0x14   : > { %v319_v61 = vadd.s32 (!%p267_p9), 512, %v3203_v18  ;;  %vm3052_vm5 = vmmov (!%p267_p9), 1   ;;  %v321_v21 = vadd.s32 (!%p267_p9), 768, %v3203_v18 }
  0x15   : > { %s4357_s17 = smov (!%p301_p10, %s2278_s17), 15  ;;  %vm447_vm2 = vcmp.ge.s32.totalorder %v3209_v23, 2  ;;  %vm504_vm3 = vcmp.ge.s32.totalorder %v3209_v23, 1  ;;  %vm449_vm8 = vcmp.ge.s32.totalorder %v3214_v28, 2  ;;  %vm4310_vm9 = vcmp.ge.s32.totalorder %v3214_v28, 1 }
  0x16   : > { %s2279_s18 = sshll.u32 %s4357_s17, 3  ;;  %vm2521_vm7 = vmpackc.low %vm504_vm3, %vm447_vm2  ;;  %vm448_vm10 = vcmp.ge.s32.totalorder %v3220_v32, 2  ;;  %vm4307_vm11 = vcmp.ge.s32.totalorder %v3220_v32, 1  ;;  %vm4303_vm13 = vcmp.lt.s32.totalorder %v3209_v23, 127  ;;  %vm4306_vm2 = vcmp.lt.s32.totalorder %v3214_v28, 127 }
  0x17   : > { %s304_s21 = scalar_lea.vmem %s4294_s0, %s2279_s18  ;;  %vm2533_vm14 = vmpackc.low %vm4310_vm9, %vm449_vm8  ;;  %vm4305_vm8 = vcmp.lt.s32.totalorder %v3220_v32, 127  ;;  %v3318_v15 = vand.u32 127, %v320_v60 }
  0x18   : > { %v3151_v0 = vld [vmem:[%s304_s21 + $0x10] sm:$0xff]  ;;  %v3153_v1 = vld [vmem:[%s304_s21 + $0x18] sm:$0xff]  ;;  %v3155_v2 = vld [vmem:[%s304_s21] sm:$0xff] }
  0x19   : > { %v2840_v3 = vpack.i.bf16 %v3153_v1, %v3151_v0  ;;  %v3159_v4 = vld [vmem:[%s304_s21 + $0x8] sm:$0xff]  ;;  %v3161_v5 = vld [vmem:[%s304_s21 + $0x20] sm:$0xff]  ;;  %v3163_v6 = vld [vmem:[%s304_s21 + $0x38] sm:$0xff]  ;;  %v2865_v9 = vpack.i.bf16 %v3153_v1, %v3155_v2 }
  0x1a   : > { %v2830_v7 = vpack.i.bf16 %v3159_v4, %v3155_v2  ;;  %v2845_v8 = vpack.i.bf16 %v3161_v5, %v3163_v6  ;;  %v2860_v10 = vpack.i.bf16 %v3151_v0, %v3159_v4  ;;  %v3176_v11 = vld [vmem:[%s304_s21 + $0x28] sm:$0xff]  ;;  %v3178_v12 = vld [vmem:[%s304_s21 + $0x30] sm:$0xff]  ;;  %vm2536_vm15 = vmpackc.low %vm4307_vm11, %vm448_vm10 }
  0x1b   : > { %2841 = vrot.lane.b32.xlu1 %v2840_v3, %s3046_s22  ;;  %v2870_v13 = vpack.i.bf16 %v3178_v12, %v3176_v11  ;;  %vm2530_vm10 = vmpackc.low %vm551_vm4, %vm3052_vm5 }
  0x1c   : > { %2831 = vrot.lane.b32.xlu0 %v2830_v7, %s3046_s22 }
  0x1f   : > { %2846 = vrot.lane.b32.xlu1 %v2845_v8, %s3046_s22 }
  0x20   : > { %2836 = vrot.lane.b32.xlu0 %v2830_v7, %s3047_s23 }
  0x23   : > { %2856 = vrot.lane.b32.xlu1 %v2845_v8, %s3047_s23 }
  0x24   : > { %2851 = vrot.lane.b32.xlu0 %v2840_v3, %s3047_s23 }
  0x27   : > { %2866 = vrot.lane.b32.xlu1 %v2865_v9, %s3048_s24 }
  0x28   : > { %2861 = vrot.lane.b32.xlu0 %v2860_v10, %s3048_s24 }
  0x2b   : > { %2871 = vrot.lane.b32.xlu1 %v2870_v13, %s3046_s22 }
  0x2c   : > { %543 = vrot.lane.b32.xlu0 %v3161_v5, %s3048_s24 }
  0x2f   : > { %594 = vrot.lane.b32.xlu1 %v3159_v4, %s3050_s25 }
  0x30   : > { %2876 = vrot.lane.b32.xlu0 %v2870_v13, %s3047_s23 }
  0x33   : > { %592 = vrot.lane.b32.xlu1 %v3155_v2, %s3050_s25 }
  0x34   : > { %596 = vrot.lane.b32.xlu0 %v3151_v0, %s3050_s25 }
  0x37   : > { %600 = vrot.lane.b32.xlu1 %v3161_v5, %s3050_s25 }
  0x38   : > { %598 = vrot.lane.b32.xlu0 %v3153_v1, %s3050_s25 }
  0x3b   : > { %549 = vrot.lane.b32.xlu1 %v3163_v6, %s3048_s24 }
  0x3c   : > { %2881 = vrot.lane.b32.xlu0 %v2870_v13, %s3048_s24 }
  0x3f   : > { %604 = vrot.lane.b32.xlu1 %v3178_v12, %s3050_s25 }
  0x40   : > { %602 = vrot.lane.b32.xlu0 %v3176_v11, %s3050_s25 }
  0x43   : > { %651 = vperm.xlu1 %2885, %v420_v16   ;;  %v322_v16 = vadd.s32 896, %v3203_v18 }
  0x44   : > { %606 = vrot.lane.b32.xlu0 %v3163_v6, %s3050_s25 }
  0x8d   : > { %v3206_v20 = vpop.permute.xlu1 %2841 }
  0x8e   : > { %v2832_v22 = vpop.permute.xlu0 %2831  ;;  %v2844_v34 = vunpack.i.h.bf16 %v3206_v20  ;;  %v2843_v38 = vunpack.i.l.bf16 %v3206_v20 }
  0x8f   : > { %v2834_v25 = vunpack.i.h.bf16 %v2832_v22  ;;  %v2833_v26 = vunpack.i.l.bf16 %v2832_v22 }
  0x90   : > { %v442_v49 = vsel %vm437_vm0, %v2843_v38, %v2844_v34 }
  0x91   : > { %v3212_v27 = vpop.permute.xlu1 %2846  ;;  %v444_v36 = vsel %vm437_vm0, %v2833_v26, %v2834_v25  ;;  %v443_v56 = vsel %vm437_vm0, %v2834_v25, %v2843_v38 }
  0x92   : > { %v2837_v29 = vpop.permute.xlu0 %2836  ;;  %v2848_v33 = vunpack.i.l.bf16 %v3212_v27 }
  0x93   : > { %v2839_v30 = vunpack.i.h.bf16 %v2837_v29  ;;  %v2838_v31 = vunpack.i.l.bf16 %v2837_v29 }
  0x94   : > { %v445_v44 = vsel %vm437_vm0, %v2848_v33, %v2833_v26  ;;  %v3337_v26 = vand.u32 127, %v322_v16 }
  0x95   : > { %v3227_v35 = vpop.permute.xlu1 %2856  ;;  %v501_v37 = vsel %vm494_vm1, %v2838_v31, %v2839_v30 }
  0x96   : > { %v2858_v39 = vunpack.i.l.bf16 %v3227_v35  ;;  %v3238_v40 = vpop.permute.xlu0 %2851  ;;  %v2520_v41 = vpack.c.bf16 %v501_v37, %v444_v36  ;;  %v2859_v22 = vunpack.i.h.bf16 %v3227_v35  ;;  %v3344_v36 = vand.u32 127, %v321_v21 }
  0x97   : > { %v2854_v42 = vunpack.i.h.bf16 %v3238_v40  ;;  %v2853_v43 = vunpack.i.l.bf16 %v3238_v40  ;;  %v3361_v40 = vld [vmem:[%s4296_s2] sm:$0xff]  ;;  %vm4313_vm9 = vcmp.lt.s32.totalorder %v3337_v26, 127 }
  0x98   : > { %2522 = vmatprep.subr.msk.bf16.mxu0 %vm2521_vm7, %v2520_v41  ;;  %v502_v45 = vsel %vm494_vm1, %v2858_v39, %v2838_v31  ;;  %vm2527_vm7 = vmpackc.low %vm4303_vm13, %vm3052_vm5  ;;  %vm451_vm13 = vcmp.ge.s32.totalorder %v3318_v15, 2 }
  0x99   : > { %v3262_v47 = vpop.permute.xlu1 %2866  ;;  %v2523_v48 = vpack.c.bf16 %v502_v45, %v445_v44  ;;  %v499_v50 = vsel %vm494_vm1, %v2853_v43, %v2854_v42  ;;  %v500_v51 = vsel %vm494_vm1, %v2839_v30, %v2853_v43  ;;  %v498_v37 = vsel %vm494_vm1, %v2854_v42, %v2859_v22 }
  0x9a   : > { %v2869_v52 = vunpack.i.h.bf16 %v3262_v47  ;;  %v2868_v53 = vunpack.i.l.bf16 %v3262_v47  ;;  %v2862_v54 = vpop.permute.xlu0 %2861  ;;  %v2532_v55 = vpack.c.bf16 %v499_v50, %v442_v49  ;;  %v2535_v59 = vpack.c.bf16 %v500_v51, %v443_v56 }
  0x9b   : > { %v2864_v57 = vunpack.i.h.bf16 %v2862_v54  ;;  %v2863_v58 = vunpack.i.l.bf16 %v2862_v54  ;;  %2525 = vmatpush1.bf16.msk.msra.mxu0 %vm3257_vm12, %v2523_v48  ;;  %vm2539_vm12 = vmpackc.low %vm4306_vm2, %vm3052_vm5  ;;  %vm620_vm2 = vcmp.lt.s32.totalorder %v3214_v28, 126 }
  0x9c   : > { %2534 = vmatprep.subr.msk.bf16.mxu1 %vm2533_vm14, %v2532_v55  ;;  %vm2542_vm14 = vmpackc.low %vm4305_vm8, %vm3052_vm5 }
  0x9d   : > { %v557_v62 = vsel %vm551_vm4, %v2863_v58, %v2864_v57  ;;  %v558_v63 = vsel %vm551_vm4, %v2868_v53, %v2863_v58  ;;  %2537 = vmatpush1.bf16.msk.msra.mxu1 %vm2536_vm15, %v2535_v59  ;;  %v3297_v3 = vpop.permute.xlu1 %2871  ;;  %v556_v7 = vsel %vm551_vm4, %v2864_v57, %v2869_v52  ;;  %vm608_vm15 = vcmp.lt.s32.totalorder %v3203_v18, 126 }
  0x9e   : > { %v2526_v8 = vpack.c.bf16 %v557_v62, %v3159_v4  ;;  %v2529_v9 = vpack.c.bf16 %v558_v63, %v3155_v2  ;;  %v3307_v10 = vpop.permute.xlu0 %543  ;;  %v3324_v2 = vand.u32 127, %v319_v61  ;;  %v2541_v17 = vpack.c.bf16 %v556_v7, %v3151_v0 }
  0x9f   : > { %v555_v13 = vsel %vm551_vm4, %v2869_v52, %v3307_v10  ;;  %v2849_v0 = vunpack.i.h.bf16 %v3212_v27  ;;  %v2874_v43 = vunpack.i.h.bf16 %v3297_v3 }
  0xa0   : > { %v2538_v4 = vpack.c.bf16 %v555_v13, %v3153_v1  ;;  %2528 = vmatprep.subr.msk.bf16.mxu0 %vm2527_vm7, %v2526_v8  ;;  %v2873_v1 = vunpack.i.l.bf16 %v3297_v3  ;;  %vm618_vm7 = vcmp.lt.s32.totalorder %v3209_v23, 126  ;;  %vm450_vm6 = vcmp.ge.s32.totalorder %v3324_v2, 2 }
  0xa1   : > { %2531 = vmatpush1.bf16.msk.msra.mxu0 %vm2530_vm10, %v2529_v9  ;;  %v595_v19 = vpop.permute.xlu1 %594  ;;  %vm4308_vm10 = vcmp.ge.s32.totalorder %v3318_v15, 1  ;;  %v441_v46 = vsel %vm437_vm0, %v2844_v34, %v2849_v0  ;;  %v438_v35 = vsel %vm437_vm0, %v2874_v43, %v2848_v33 }
  0xa2   : > { %v2877_v24 = vpop.permute.xlu0 %2876  ;;  %2540 = vmatprep.subr.msk.bf16.mxu1 %vm2539_vm12, %v2538_v4  ;;  %vm4309_vm12 = vcmp.ge.s32.totalorder %v3324_v2, 1  ;;  %v440_v44 = vsel %vm437_vm0, %v2849_v0, %v2873_v1  ;;  %vm3367_vm8 = vmpackc.low %vm4308_vm10, %vm451_vm13  ;;  %vm453_vm13 = vcmp.ge.s32.totalorder %v3337_v26, 2  ;;  %vm510_vm10 = vcmp.ge.s32.totalorder %v3337_v26, 1 }
  0xa3   : > { %v2878_v25 = vunpack.i.l.bf16 %v2877_v24  ;;  %2543 = vmatpush1.bf16.msk.msra.mxu1 %vm2542_vm14, %v2541_v17  ;;  %v2879_v29 = vunpack.i.h.bf16 %v2877_v24  ;;  %vm654_vm14 = vcmask 326656   ;;  %vm3382_vm11 = vmpackc.low %vm4309_vm12, %vm450_vm6  ;;  %v2547_v20 = vpack.c.bf16 %v498_v37, %v441_v46 }
  0xa4   : > { %vm509_vm6 = vcmp.ge.s32.totalorder %v3344_v36, 1  ;;  %v439_v51 = vsel %vm437_vm0, %v2873_v1, %v2874_v43  ;;  %vm619_vm12 = vcmp.lt.s32.totalorder %v3220_v32, 126 }
  0xa5   : > { %v497_v30 = vsel %vm494_vm1, %v2859_v22, %v2878_v25  ;;  %v3341_v31 = vpop.permute.xlu1 %592  ;;  %v495_v34 = vsel %vm494_vm1, %v2879_v29, %v2858_v39  ;;  %v496_v52 = vsel %vm494_vm1, %v2878_v25, %v2879_v29 }
  0xa6   : > { %v615_v38 = vsel %vm608_vm15, %v3341_v31, %v595_v19  ;;  %v597_v41 = vpop.permute.xlu0 %596  ;;  %v2544_v48 = vpack.c.bf16 %v497_v30, %v440_v44  ;;  %v2556_v27 = vpack.c.bf16 %v495_v34, %v438_v35  ;;  %v2559_v33 = vpack.c.bf16 %v496_v52, %v439_v51  ;;  %v952_v51 = vld [vmem:[%s4299_s5] sm:$0xff]  ;;  %v953_v52 = vld [vmem:[%s4299_s5 + $0x8] sm:$0xff] }
  0xa7   : > { %v614_v45 = vsel %vm608_vm15, %v595_v19, %v597_v41 }
  0xa8   : > { %2286 = vmatprep.subr.msk.mxu0 %vm618_vm7, %v614_v45  ;;  %vm452_vm7 = vcmp.ge.s32.totalorder %v3344_v36, 2 }
  0xa9   : > { %2287 = vmatpush1.msk.msra.mxu0 %vm608_vm15, %v615_v38  ;;  %v601_v50 = vpop.permute.xlu1 %600  ;;  %vm2560_vm0 = vmpackc.low %vm509_vm6, %vm452_vm7 }
  0xaa   : > { %v599_v54 = vpop.permute.xlu0 %598  ;;  %2288 = vmatmul.mubr.msk.f32.vlgmr.msra.gmra.mrb[0].mxu0 %vm654_vm14, %v3361_v40  ;;  %2546 = vmatprep.subr.msk.bf16.mxu0 %vm3367_vm8, %v2544_v48  ;;  %vm2557_vm8 = vmpackc.low %vm510_vm10, %vm453_vm13  ;;  %vm4312_vm13 = vcmp.lt.s32.totalorder %v3344_v36, 127 }
  0xab   : > { %v612_v39 = vsel %vm608_vm15, %v599_v54, %v601_v50  ;;  %v613_v55 = vsel %vm608_vm15, %v597_v41, %v599_v54  ;;  %2549 = vmatpush1.bf16.msk.msra.mxu0 %vm3382_vm11, %v2547_v20  ;;  %864 = vmatprep.mubr.f32.mxu0 %v3049_v14  ;;  %vm4311_vm11 = vcmp.lt.s32.totalorder %v3318_v15, 127 }
  0xac   : > { %2295 = vmatprep.subr.msk.mxu1 %vm620_vm2, %v612_v39  ;;  %vm2563_vm2 = vmpackc.low %vm4313_vm9, %vm3052_vm5  ;;  %vm623_vm9 = vcmp.lt.s32.totalorder %v3344_v36, 126 }
  0xad   : > { %2296 = vmatpush1.msk.msra.mxu1 %vm619_vm12, %v613_v55  ;;  %v550_v56 = vpop.permute.xlu1 %549  ;;  %vm564_vm12 = vcmp.lt.s32.totalorder %v3324_v2, 127  ;;  %vm2551_vm7 = vmpackc.low %vm4311_vm11, %vm3052_vm5  ;;  %vm624_vm11 = vcmp.lt.s32.totalorder %v3337_v26, 126 }
  0xae   : > { %v559_v57 = vsel %vm551_vm4, %v550_v56, %v2868_v53  ;;  %v2882_v58 = vpop.permute.xlu0 %2881  ;;  %2297 = vmatmul.mubr.msk.f32.vlgmr.msra.gmra.mrb[0].mxu1 %vm654_vm14, %v3361_v40  ;;  %2558 = vmatprep.subr.msk.bf16.mxu1 %vm2557_vm8, %v2556_v27  ;;  %vm2566_vm8 = vmpackc.low %vm4312_vm13, %vm3052_vm5  ;;  %vm621_vm13 = vcmp.lt.s32.totalorder %v3324_v2, 126 }
  0xaf   : > { %v2562_v59 = vpack.c.bf16 %v559_v57, %v3163_v6  ;;  %v2884_v60 = vunpack.i.h.bf16 %v2882_v58  ;;  %v2883_v61 = vunpack.i.l.bf16 %v2882_v58  ;;  %2561 = vmatpush1.bf16.msk.msra.mxu1 %vm2560_vm0, %v2559_v33  ;;  %935 = vmatprep.mubr.f32.mxu1 %v3049_v14  ;;  %vm2554_vm0 = vmpackc.low %vm564_vm12, %vm3052_vm5 }
  0xb1   : > { %v552_v47 = vsel %vm551_vm4, %v2884_v60, %v550_v56  ;;  %v553_v53 = vsel %vm551_vm4, %v2883_v61, %v2884_v60  ;;  %v554_v6 = vsel %vm551_vm4, %v3307_v10, %v2883_v61  ;;  %2564 = vmatprep.subr.msk.bf16.mxu1 %vm2563_vm2, %v2562_v59  ;;  %v605_v62 = vpop.permute.xlu1 %604  ;;  %vm622_vm2 = vcmp.lt.s32.totalorder %v3318_v15, 126 }
  0xb2   : > { %v2565_v63 = vpack.c.bf16 %v552_v47, %v3178_v12  ;;  %v2550_v3 = vpack.c.bf16 %v553_v53, %v3176_v11  ;;  %v2553_v7 = vpack.c.bf16 %v554_v6, %v3161_v5  ;;  %v603_v8 = vpop.permute.xlu0 %602 }
  0xb3   : > { %v610_v9 = vsel %vm608_vm15, %v603_v8, %v605_v62  ;;  %v611_v10 = vsel %vm608_vm15, %v601_v50, %v603_v8 }
  0xb4   : > { %2552 = vmatprep.subr.msk.bf16.mxu0 %vm2551_vm7, %v2550_v3  ;;  %2567 = vmatpush1.bf16.msk.msra.mxu1 %vm2566_vm8, %v2565_v63  ;;  %v950_v3 = vld [vmem:[%s4298_s4] sm:$0xff]  ;;  %vm1028_vm7 = vcmask 195584   ;;  %vm4324_vm8 = vcmp.lt.s32.totalorder %v3214_v28, 127 }
  0xb5   : > { %2555 = vmatpush1.bf16.msk.msra.mxu0 %vm2554_vm0, %v2553_v7  ;;  %vm4325_vm0 = vcmp.lt.s32.totalorder %v3220_v32, 127 }
  0xb6   : > { %v607_v12 = vpop.permute.xlu0 %606  ;;  %2304 = vmatprep.subr.msk.mxu0 %vm622_vm2, %v610_v9  ;;  %vm4326_vm2 = vcmp.ge.s32.totalorder %v3203_v18, 1 }
  0xb7   : > { %v609_v5 = vsel %vm608_vm15, %v605_v62, %v607_v12  ;;  %v616_v11 = vsel %vm608_vm15, %v607_v12, %v3341_v31  ;;  %vm4322_vm15 = vcmp.ge.s32.totalorder %v3214_v28, 1 }
  0xb8   : > { %2313 = vmatprep.subr.msk.mxu1 %vm624_vm11, %v616_v11  ;;  %vm4323_vm11 = vcmp.ge.s32.totalorder %v3220_v32, 1 }
  0xb9   : > { %2305 = vmatpush1.msk.msra.mxu0 %vm621_vm13, %v611_v10  ;;  %2314 = vmatpush1.msk.msra.mxu1 %vm623_vm9, %v609_v5  ;;  %vm2569_vm9 = vmpackc.low %vm3052_vm5, %vm504_vm3  ;;  %v951_v5 = vld [vmem:[%s4298_s4 + $0x8] sm:$0xff] }
  0xba   : > { %2306 = vmatmul.mubr.msk.f32.vlgmr.msra.gmra.mrb[2].mxu0 %vm654_vm14, %v3361_v40  ;;  %2315 = vmatmul.mubr.msk.f32.vlgmr.msra.gmra.mrb[2].mxu1 %vm654_vm14, %v3361_v40  ;;  %vm2575_vm14 = vmpackc.low %vm3052_vm5, %vm4322_vm15 }
  0xbb   : > { %1176 = vmatprep.mubr.f32.mxu1 %v3049_v14  ;;  %1099 = vmatprep.mubr.f32.mxu0 %v3049_v14  ;;  %vm2578_vm13 = vmpackc.low %vm3052_vm5, %vm4323_vm11  ;;  %vm4327_vm11 = vcmp.lt.s32.totalorder %v3209_v23, 127 }
  0xbc   : > { %vm2587_vm15 = vmpackc.low %vm3052_vm5, %vm510_vm10 }
  0xc2   : > { %v652_v13 = vpop.permute.xlu1 %651 }
 0x17d   : > { %v724_v4 = vpop.f32.mrb[0].mxu0 }
 0x17e   : > { %v726_v16 = vpop.f32.mrb[1].mxu0  ;;  %v725_v17 = vadd.f32 %v724_v4, %v652_v13 }
 0x17f   : > { %v727_v19 = vadd.f32 %v726_v16, %v652_v13 }
 0x180   : > { %v3479_v21 = vmax.f32 %v725_v17, 0.0 }
 0x181   : > { %v943_v22 = vmax.f32 %v727_v19, 0.0  ;;  %v795_v24 = vpop.f32.mrb[0].mxu1 }
 0x182   : > { %v796_v1 = vadd.f32 %v795_v24, %v652_v13  ;;  %v797_v25 = vpop.f32.mrb[1].mxu1 }
 0x183   : > { %v798_v0 = vadd.f32 %v797_v25, %v652_v13  ;;  %v2891_v29 = vpack.i.bf16 %v3479_v21, %v943_v22 }
 0x184   : > { %v944_v30 = vmax.f32 %v796_v1, 0.0 }
 0x185   : > { %v945_v31 = vmax.f32 %v798_v0, 0.0  ;;  %2892 = vrot.lane.b32.xlu1 %v2891_v29, %s3047_s23 }
 0x186   : > { %990 = vrot.lane.b32.xlu0 %v944_v30, %s3048_s24 }
 0x187   : > { %v2886_v37 = vpack.i.bf16 %v945_v31, %v944_v30 }
 0x18a   : > { %2887 = vrot.lane.b32.xlu0 %v2886_v37, %s3047_s23 }
 0x18d   : > { %v866_v38 = vpop.f32.mrb[2].mxu0  ;;  %v937_v41 = vpop.f32.mrb[2].mxu1 }
 0x18e   : > { %v867_v43 = vadd.f32 %v866_v38, %v652_v13  ;;  %v938_v44 = vadd.f32 %v937_v41, %v652_v13  ;;  %v939_v45 = vpop.f32.mrb[3].mxu1  ;;  %992 = vrot.lane.b32.xlu0 %v945_v31, %s3048_s24  ;;  %v868_v40 = vpop.f32.mrb[3].mxu0 }
 0x18f   : > { %v940_v42 = vadd.f32 %v939_v45, %v652_v13  ;;  %v869_v46 = vadd.f32 %v868_v40, %v652_v13 }
 0x190   : > { %v3486_v48 = vmax.f32 %v867_v43, 0.0  ;;  %v3488_v49 = vmax.f32 %v938_v44, 0.0 }
 0x191   : > { %v3490_v20 = vmax.f32 %v940_v42, 0.0  ;;  %v3492_v34 = vmax.f32 %v869_v46, 0.0 }
 0x192   : > { %994 = vrot.lane.b32.xlu1 %v3486_v48, %s3048_s24 }
 0x193   : > { %964 = vrot.lane.b32.xlu0 %v3492_v34, %s3047_s23  ;;  %v2896_v50 = vpack.i.bf16 %v3490_v20, %v3488_v49 }
 0x196   : > { %2897 = vrot.lane.b32.xlu1 %v2896_v50, %s3047_s23 }
 0x197   : > { %986 = vrot.lane.b32.xlu0 %v3479_v21, %s3048_s24 }
 0x19a   : > { %988 = vrot.lane.b32.xlu1 %v943_v22, %s3048_s24 }
 0x19b   : > { %998 = vrot.lane.b32.xlu0 %v3488_v49, %s3048_s24 }
 0x19e   : > { %1000 = vrot.lane.b32.xlu1 %v3490_v20, %s3048_s24 }
 0x19f   : > { %996 = vrot.lane.b32.xlu0 %v3492_v34, %s3048_s24 }
 0x1a2   : > { %962 = vrot.lane.b32.xlu1 %v3486_v48, %s3047_s23 }
 0x1a3   : > { %1025 = vperm.xlu0 %2901, %v953_v52  }
 0x1a6   : > { %1020 = vperm.xlu1 %2885, %v952_v51  }
 0x1f7   : > { %v2893_v54 = vpop.permute.xlu1 %2892 }
 0x1f8   : > { %v2895_v35 = vunpack.i.h.bf16 %v2893_v54  ;;  %v2894_v39 = vunpack.i.l.bf16 %v2893_v54  ;;  %v991_v55 = vpop.permute.xlu0 %990 }
 0x1fa   : > { %v976_v27 = vsel %vm494_vm1, %v2895_v35, %v2894_v39 }
 0x1fb   : > { %v2568_v33 = vpack.c.bf16 %v943_v22, %v976_v27 }
 0x1fc   : > { %v2888_v56 = vpop.permute.xlu0 %2887 }
 0x1fd   : > { %v2890_v57 = vunpack.i.h.bf16 %v2888_v56  ;;  %v2889_v58 = vunpack.i.l.bf16 %v2888_v56  ;;  %2570 = vmatprep.subr.msk.bf16.mxu0 %vm2569_vm9, %v2568_v33  ;;  %vm2572_vm9 = vmpackc.low %vm3052_vm5, %vm4326_vm2 }
 0x1ff   : > { %v974_v59 = vsel %vm494_vm1, %v2889_v58, %v2890_v57  ;;  %v975_v60 = vsel %vm494_vm1, %v2894_v39, %v2889_v58 }
 0x200   : > { %v2574_v61 = vpack.c.bf16 %v945_v31, %v974_v59  ;;  %v2577_v47 = vpack.c.bf16 %v944_v30, %v975_v60  ;;  %v993_v53 = vpop.permute.xlu0 %992 }
 0x201   : > { %v1006_v7 = vsel %vm551_vm4, %v991_v55, %v993_v53 }
 0x202   : > { %2576 = vmatprep.subr.msk.bf16.mxu1 %vm2575_vm14, %v2574_v61  ;;  %vm2590_vm14 = vmpackc.low %vm3052_vm5, %vm509_vm6 }
 0x203   : > { %2579 = vmatpush1.bf16.msk.msra.mxu1 %vm2578_vm13, %v2577_v47  ;;  %vm4328_vm13 = vcmp.lt.s32.totalorder %v3337_v26, 127 }
 0x204   : > { %v995_v6 = vpop.permute.xlu1 %994 }
 0x205   : > { %v1005_v62 = vsel %vm551_vm4, %v993_v53, %v995_v6  ;;  %v965_v63 = vpop.permute.xlu0 %964 }
 0x206   : > { %2324 = vmatprep.subr.msk.mxu1 %vm4324_vm8, %v1005_v62  ;;  %vm4329_vm8 = vcmp.lt.s32.totalorder %v3344_v36, 127 }
 0x207   : > { %2325 = vmatpush1.msk.msra.mxu1 %vm4325_vm0, %v1006_v7  ;;  %vm4330_vm0 = vcmp.ge.s32.totalorder %v3318_v15, 1 }
 0x208   : > { %v2898_v8 = vpop.permute.xlu1 %2897  ;;  %2326 = vmatmul.mubr.msk.f32.vlgmr.msra.gmra.mrb[4].mxu1 %vm1028_vm7, %v950_v3  ;;  %vm2581_vm2 = vmpackc.low %vm3052_vm5, %vm4330_vm0 }
 0x209   : > { %v2900_v9 = vunpack.i.h.bf16 %v2898_v8  ;;  %v2899_v12 = vunpack.i.l.bf16 %v2898_v8  ;;  %1182 = vmatprep.mubr.f32.mxu1 %v3049_v14  ;;  %v987_v11 = vpop.permute.xlu0 %986 }
 0x20b   : > { %v970_v10 = vsel %vm494_vm1, %v2899_v12, %v2900_v9  ;;  %v971_v13 = vsel %vm494_vm1, %v965_v63, %v2899_v12  ;;  %v977_v4 = vsel %vm494_vm1, %v2900_v9, %v2895_v35 }
 0x20c   : > { %v2571_v16 = vpack.c.bf16 %v3479_v21, %v977_v4  ;;  %v2586_v17 = vpack.c.bf16 %v3490_v20, %v970_v10  ;;  %v2589_v19 = vpack.c.bf16 %v3488_v49, %v971_v13  ;;  %v989_v22 = vpop.permute.xlu1 %988  ;;  %2327 = vmatmul.mubr.msk.f32.gmra.mrb[6].mxu1 %vm1028_vm7, %v951_v5 }
 0x20d   : > { %v1007_v24 = vsel %vm551_vm4, %v989_v22, %v991_v55  ;;  %1330 = vmatprep.mubr.f32.mxu1 %v3049_v14  ;;  %v999_v21 = vpop.permute.xlu0 %998  ;;  %v1008_v25 = vsel %vm551_vm4, %v987_v11, %v989_v22 }
 0x20e   : > { %2573 = vmatpush1.bf16.msk.msra.mxu0 %vm2572_vm9, %v2571_v16  ;;  %2588 = vmatprep.subr.msk.bf16.mxu1 %vm2587_vm15, %v2586_v17  ;;  %vm4331_vm9 = vcmp.ge.s32.totalorder %v3324_v2, 1 }
 0x20f   : > { %2318 = vmatprep.subr.msk.mxu0 %vm4327_vm11, %v1007_v24  ;;  %2591 = vmatpush1.bf16.msk.msra.mxu1 %vm2590_vm14, %v2589_v19  ;;  %vm2584_vm15 = vmpackc.low %vm3052_vm5, %vm4331_vm9  ;;  %vm4332_vm14 = vcmp.lt.s32.totalorder %v3318_v15, 127 }
 0x210   : > { %v1001_v1 = vpop.permute.xlu1 %1000  ;;  %vm2593_vm5 = vmpackc.low %vm504_vm3, %vm504_vm3  ;;  %vm4334_vm3 = vcmp.ge.s32.totalorder %v3214_v28, 1 }
 0x211   : > { %v1002_v0 = vsel %vm551_vm4, %v999_v21, %v1001_v1  ;;  %v1009_v29 = vsel %vm551_vm4, %v1001_v1, %v987_v11  ;;  %v997_v38 = vpop.permute.xlu0 %996 }
 0x212   : > { %2319 = vmatpush1.msk.msra.mxu0 %vm551_vm4, %v1008_v25  ;;  %2336 = vmatprep.subr.msk.mxu1 %vm4328_vm13, %v1009_v29  ;;  %v1003_v44 = vsel %vm551_vm4, %v997_v38, %v999_v21  ;;  %v1004_v45 = vsel %vm551_vm4, %v995_v6, %v997_v38  ;;  %vm2609_vm13 = vmpackc.low %vm4334_vm3, %vm4334_vm3 }
 0x213   : > { %2320 = vmatmul.mubr.msk.f32.vlgmr.msra.gmra.mrb[4].mxu0 %vm1028_vm7, %v950_v3  ;;  %2337 = vmatpush1.msk.msra.mxu1 %vm4329_vm8, %v1002_v0  ;;  %vm4335_vm8 = vcmp.ge.s32.totalorder %v3220_v32, 1 }
 0x214   : > { %v963_v30 = vpop.permute.xlu1 %962  ;;  %2338 = vmatmul.mubr.msk.f32.vlgmr.msra.gmra.mrb[8].mxu1 %vm1028_vm7, %v950_v3  ;;  %1105 = vmatprep.mubr.f32.mxu0 %v3049_v14  ;;  %vm2612_vm0 = vmpackc.low %vm4335_vm8, %vm4335_vm8 }
 0x215   : > { %v972_v31 = vsel %vm494_vm1, %v963_v30, %v965_v63  ;;  %v973_v37 = vsel %vm494_vm1, %v2890_v57, %v963_v30  ;;  %1336 = vmatprep.mubr.f32.mxu1 %v3049_v14 }
 0x216   : > { %v2580_v41 = vpack.c.bf16 %v3492_v34, %v972_v31  ;;  %v2583_v43 = vpack.c.bf16 %v3486_v48, %v973_v37 }
 0x217   : > { %2321 = vmatmul.mubr.msk.f32.gmra.mrb[6].mxu0 %vm1028_vm7, %v951_v5 }
 0x218   : > { %2582 = vmatprep.subr.msk.bf16.mxu0 %vm2581_vm2, %v2580_v41  ;;  %2339 = vmatmul.mubr.msk.f32.gmra.mrb[10].mxu1 %vm1028_vm7, %v951_v5  ;;  %vm4336_vm2 = vcmp.lt.s32.totalorder %v3209_v23, 127 }
 0x219   : > { %2585 = vmatpush1.bf16.msk.msra.mxu0 %vm2584_vm15, %v2583_v43  ;;  %1253 = vmatprep.mubr.f32.mxu0 %v3049_v14  ;;  %vm2603_vm9 = vmpackc.low %vm4336_vm2, %vm4336_vm2 }
 0x21a   : > { %2330 = vmatprep.subr.msk.mxu0 %vm4332_vm14, %v1003_v44  ;;  %1633 = vmatprep.mubr.f32.mxu1 %v3049_v14  ;;  %vm2606_vm15 = vmpackc.low %vm551_vm4, %vm551_vm4  ;;  %vm1494_vm14 = vcmask 392192  }
 0x21d   : > { %2331 = vmatpush1.msk.msra.mxu0 %vm564_vm12, %v1004_v45 }
 0x21e   : > { %2332 = vmatmul.mubr.msk.f32.vlgmr.msra.gmra.mrb[8].mxu0 %vm1028_vm7, %v950_v3 }
 0x21f   : > { %1259 = vmatprep.mubr.f32.mxu0 %v3049_v14 }
 0x222   : > { %2333 = vmatmul.mubr.msk.f32.gmra.mrb[10].mxu0 %vm1028_vm7, %v951_v5  ;;  %v1026_v48 = vpop.permute.xlu0 %1025  ;;  %vm4333_vm7 = vcmp.ge.s32.totalorder %v3203_v18, 1  ;;  %v1808_v18 = vld [vmem:[%s4295_s1 + $0x90] sm:$0xff] }
 0x223   : > { %1562 = vmatprep.mubr.f32.mxu0 %v3049_v14  ;;  %vm2596_vm11 = vmpackc.low %vm4333_vm7, %vm4333_vm7 }
 0x225   : > { %v1021_v46 = vpop.permute.xlu1 %1020 }
 0x2db   : > { %v1178_v40 = vpop.f32.mrb[4].mxu1 }
 0x2dc   : > { %v1180_v42 = vpop.f32.mrb[5].mxu1  ;;  %v1179_v49 = vadd.f32 %v1178_v40, %v1021_v46 }
 0x2dd   : > { %v1181_v20 = vadd.f32 %v1180_v42, %v1021_v46 }
 0x2de   : > { %v1345_v54 = vmax.f32 %v1179_v49, 0.0 }
 0x2df   : > { %v1184_v34 = vpop.f32.mrb[6].mxu1  ;;  %v1346_v39 = vmax.f32 %v1181_v20, 0.0 }
 0x2e0   : > { %v1185_v50 = vadd.f32 %v1184_v34, %v1026_v48  ;;  %v1186_v51 = vpop.f32.mrb[7].mxu1 }
 0x2e1   : > { %v1187_v52 = vadd.f32 %v1186_v51, %v1026_v48 }
 0x2e2   : > { %v1353_v35 = vmax.f32 %v1185_v50, 0.0 }
 0x2e3   : > { %v1354_v55 = vmax.f32 %v1187_v52, 0.0 }
 0x2e4   : > { %v3617_v27 = vpack.c.bf16 %v1353_v35, %v1345_v54  ;;  %v2902_v33 = vpack.i.bf16 %v1353_v35, %v1345_v54 }
 0x2e5   : > { %v2922_v56 = vpack.i.bf16 %v1354_v55, %v1346_v39  ;;  %v3619_v57 = vpack.c.bf16 %v1354_v55, %v1346_v39 }
 0x2e6   : > { %v1101_v58 = vpop.f32.mrb[4].mxu0  ;;  %2903 = vrot.lane.b32.xlu1 %v2902_v33, %s3047_s23 }
 0x2e7   : > { %v1103_v59 = vpop.f32.mrb[5].mxu0  ;;  %v1332_v60 = vpop.f32.mrb[8].mxu1  ;;  %v1102_v47 = vadd.f32 %v1101_v58, %v1021_v46 }
 0x2e8   : > { %v1334_v61 = vpop.f32.mrb[9].mxu1  ;;  %v1104_v53 = vadd.f32 %v1103_v59, %v1021_v46  ;;  %v1333_v6 = vadd.f32 %v1332_v60, %v1021_v46 }
 0x2e9   : > { %v1335_v62 = vadd.f32 %v1334_v61, %v1021_v46  ;;  %v1343_v11 = vmax.f32 %v1102_v47, 0.0 }
 0x2ea   : > { %v1107_v63 = vpop.f32.mrb[6].mxu0  ;;  %v1344_v10 = vmax.f32 %v1104_v53, 0.0  ;;  %v1349_v16 = vmax.f32 %v1333_v6, 0.0 }
 0x2eb   : > { %v1108_v3 = vadd.f32 %v1107_v63, %v1026_v48  ;;  %v1109_v7 = vpop.f32.mrb[7].mxu0  ;;  %v1338_v8 = vpop.f32.mrb[10].mxu1  ;;  %v1350_v17 = vmax.f32 %v1335_v62, 0.0 }
 0x2ec   : > { %v1110_v9 = vadd.f32 %v1109_v7, %v1026_v48  ;;  %v1339_v12 = vadd.f32 %v1338_v8, %v1026_v48  ;;  %v1340_v5 = vpop.f32.mrb[11].mxu1 }
 0x2ed   : > { %v1351_v13 = vmax.f32 %v1108_v3, 0.0  ;;  %v1341_v4 = vadd.f32 %v1340_v5, %v1026_v48 }
 0x2ee   : > { %v1352_v19 = vmax.f32 %v1110_v9, 0.0  ;;  %v1357_v22 = vmax.f32 %v1339_v12, 0.0 }
 0x2ef   : > { %v3622_v24 = vpack.c.bf16 %v1351_v13, %v1343_v11  ;;  %v1358_v21 = vmax.f32 %v1341_v4, 0.0  ;;  %v2907_v1 = vpack.i.bf16 %v1351_v13, %v1343_v11 }
 0x2f0   : > { %v3624_v25 = vpack.c.bf16 %v1357_v22, %v1349_v16  ;;  %v2912_v0 = vpack.i.bf16 %v1352_v19, %v1344_v10  ;;  %v2962_v29 = vpack.i.bf16 %v1357_v22, %v1349_v16  ;;  %v3627_v37 = vpack.c.bf16 %v1352_v19, %v1344_v10 }
 0x2f1   : > { %v1255_v30 = vpop.f32.mrb[8].mxu0  ;;  %2908 = vrot.lane.b32.xlu1 %v2907_v1, %s3047_s23  ;;  %v2917_v31 = vpack.i.bf16 %v1358_v21, %v1350_v17  ;;  %v3629_v41 = vpack.c.bf16 %v1358_v21, %v1350_v17 }
 0x2f2   : > { %v1257_v38 = vpop.f32.mrb[9].mxu0  ;;  %v1256_v43 = vadd.f32 %v1255_v30, %v1021_v46 }
 0x2f3   : > { %2918 = vrot.lane.b32.xlu0 %v2917_v31, %s3047_s23  ;;  %v1258_v44 = vadd.f32 %v1257_v38, %v1021_v46 }
 0x2f4   : > { %v1347_v20 = vmax.f32 %v1256_v43, 0.0 }
 0x2f5   : > { %v1261_v45 = vpop.f32.mrb[10].mxu0  ;;  %2913 = vrot.lane.b32.xlu1 %v2912_v0, %s3047_s23  ;;  %v1348_v50 = vmax.f32 %v1258_v44, 0.0 }
 0x2f6   : > { %v1262_v40 = vadd.f32 %v1261_v45, %v1026_v48  ;;  %v1263_v42 = vpop.f32.mrb[11].mxu0 }
 0x2f7   : > { %v1264_v49 = vadd.f32 %v1263_v42, %v1026_v48  ;;  %2923 = vrot.lane.b32.xlu0 %v2922_v56, %s3047_s23  ;;  %v1360_v48 = vld [vmem:[%s4301_s7] sm:$0xff] }
 0x2f8   : > { %v1355_v34 = vmax.f32 %v1262_v40, 0.0 }
 0x2f9   : > { %v1356_v51 = vmax.f32 %v1264_v49, 0.0  ;;  %2928 = vrot.lane.b32.xlu1 %v2912_v0, %s3048_s24 }
 0x2fa   : > { %v3635_v52 = vpack.c.bf16 %v1355_v34, %v1347_v20  ;;  %v2947_v54 = vpack.i.bf16 %v1355_v34, %v1347_v20 }
 0x2fb   : > { %2933 = vrot.lane.b32.xlu0 %v2902_v33, %s3048_s24  ;;  %v2957_v46 = vpack.i.bf16 %v1356_v51, %v1348_v50  ;;  %v3638_v35 = vpack.c.bf16 %v1356_v51, %v1348_v50 }
 0x2fd   : > { %2938 = vrot.lane.b32.xlu1 %v2907_v1, %s3048_s24 }
 0x2ff   : > { %2943 = vrot.lane.b32.xlu0 %v2922_v56, %s3048_s24 }
 0x301   : > { %2948 = vrot.lane.b32.xlu1 %v2947_v54, %s3048_s24 }
 0x303   : > { %2953 = vrot.lane.b32.xlu0 %v2947_v54, %s3047_s23 }
 0x305   : > { %2958 = vrot.lane.b32.xlu1 %v2957_v46, %s3047_s23 }
 0x307   : > { %2963 = vrot.lane.b32.xlu0 %v2962_v29, %s3047_s23  ;;  %s2377_s23 = sshll.u32 %s3120_s9, 7  ;;  %s3053_s9 = smov [#allocation2]  }
 0x308   : > { %s4252_s19 = scalar_lea.hbm %s4302_s8, %s2377_s23  ;;  %s2986_s22 = sshll.u32 %s3053_s9, 4  ;;  %s2987_s22 = int_to_ptr.vmem [resolvable:$false] %s2986_s22 }
 0x309   : > { %2973 = vrot.lane.b32.xlu1 %v2957_v46, %s3048_s24  ;;  %s2988_s25 = scalar_lea.vmem %s2987_s22, 256 }
 0x30b   : > { %2968 = vrot.lane.b32.xlu0 %v2962_v29, %s3048_s24 }
 0x30d   : > { %2978 = vrot.lane.b32.xlu1 %v2917_v31, %s3048_s24  ;;  %s299_s24 = scalar_lea.vmem [#allocation2], %s2277_s12 }
 0x30e   : > { %s2214_s13 = sshll.u32 %s299_s24, 4  ;;  %s4254_s13 = int_to_ptr.vmem [resolvable:$true] %s2214_s13 }
 0x30f   : > { %1491 = vperm.xlu0 %2901, %v1360_v48   ;;  %s2982_s21 = scalar_lea.vmem %s4254_s13, 128  ;;  %p2989_p0 = scmp.lt.s32.totalorder %s4254_s13, %s2987_s22 }
 0x310   : > { %p2983_p11 = scmp.ne.s32.totalorder %s4254_s13, %s2982_s21  ;;  %p2990_p1 = scmp.lt.s32.totalorder %s2988_s25, %s2982_s21 }
 0x312   : > { %p2984_p12 = pnand %p2983_p11, %p3137_p5  ;;  %p2991_p2 = por %p2990_p1, %p2989_p0 }
 0x314   : > { %p2985_p13 = pneg %p2984_p12 }
 0x316   : > { %p2992_p3 = pnand %p2991_p2, %p2985_p13 }
 0x358   : > { %v2904_v39 = vpop.permute.xlu1 %2903 }
 0x359   : > { %v2906_v3 = vunpack.i.h.bf16 %v2904_v39  ;;  %v2905_v7 = vunpack.i.l.bf16 %v2904_v39 }
 0x363   : > { %v2909_v55 = vpop.permute.xlu1 %2908 }
 0x364   : > { %v2911_v59 = vunpack.i.h.bf16 %v2909_v55  ;;  %v2910_v60 = vunpack.i.l.bf16 %v2909_v55 }
 0x365   : > { %v3652_v33 = vpop.permute.xlu0 %2918 }
 0x366   : > { %v2921_v56 = vunpack.i.h.bf16 %v3652_v33  ;;  %v2920_v58 = vunpack.i.l.bf16 %v3652_v33 }
 0x367   : > { %v2914_v61 = vpop.permute.xlu1 %2913 }
 0x368   : > { %v2916_v47 = vunpack.i.h.bf16 %v2914_v61  ;;  %v2915_v53 = vunpack.i.l.bf16 %v2914_v61  ;;  %v1407_v6 = vsel %vm494_vm1, %v2920_v58, %v2910_v60  ;;  %v1408_v62 = vsel %vm494_vm1, %v2921_v56, %v2911_v59  ;;  %v3735_v61 = vld [vmem:[%s4300_s6] sm:$0xff] }
 0x369   : > { %v3664_v63 = vpop.permute.xlu0 %2923  ;;  %v2595_v13 = vpack.c.bf16 %v1408_v62, %v1407_v6 }
 0x36a   : > { %v1405_v8 = vsel %vm494_vm1, %v2910_v60, %v2915_v53  ;;  %v1406_v9 = vsel %vm494_vm1, %v2911_v59, %v2916_v47  ;;  %v2926_v5 = vunpack.i.h.bf16 %v3664_v63  ;;  %v2925_v11 = vunpack.i.l.bf16 %v3664_v63 }
 0x36b   : > { %v2592_v12 = vpack.c.bf16 %v1406_v9, %v1405_v8  ;;  %v2929_v10 = vpop.permute.xlu1 %2928  ;;  %v1403_v4 = vsel %vm494_vm1, %v2915_v53, %v2905_v7  ;;  %v1404_v16 = vsel %vm494_vm1, %v2916_v47, %v2906_v3 }
 0x36c   : > { %v1401_v17 = vsel %vm494_vm1, %v2905_v7, %v2925_v11  ;;  %v1402_v19 = vsel %vm494_vm1, %v2906_v3, %v2926_v5  ;;  %v2931_v22 = vunpack.i.h.bf16 %v2929_v10  ;;  %v2930_v0 = vunpack.i.l.bf16 %v2929_v10 }
 0x36d   : > { %v2934_v21 = vpop.permute.xlu0 %2933  ;;  %2594 = vmatprep.subr.msk.bf16.mxu0 %vm2593_vm5, %v2592_v12  ;;  %v2608_v1 = vpack.c.bf16 %v1402_v19, %v1401_v17  ;;  %v2611_v31 = vpack.c.bf16 %v1404_v16, %v1403_v4  ;;  %vm4337_vm5 = vcmp.lt.s32.totalorder %v3214_v28, 127 }
 0x36e   : > { %v2936_v29 = vunpack.i.h.bf16 %v2934_v21  ;;  %v2935_v30 = vunpack.i.l.bf16 %v2934_v21  ;;  %2597 = vmatpush1.bf16.msk.msra.mxu0 %vm2596_vm11, %v2595_v13  ;;  %vm2619_vm7 = vmpackc.low %vm4337_vm5, %vm4337_vm5  ;;  %vm4338_vm11 = vcmp.lt.s32.totalorder %v3220_v32, 127  ;;  %v1827_v13 = vld [vmem:[%s4295_s1 + $0x128] sm:$0xff] }
 0x36f   : > { %v3692_v38 = vpop.permute.xlu1 %2938  ;;  %2599 = vmatprep.subr.bf16.mxu0 %v3627_v37  ;;  %2610 = vmatprep.subr.msk.bf16.mxu1 %vm2609_vm13, %v2608_v1  ;;  %vm2622_vm3 = vmpackc.low %vm4338_vm11, %vm4338_vm11  ;;  %vm4339_vm13 = vcmp.ge.s32.totalorder %v3318_v15, 1 }
 0x370   : > { %v1467_v43 = vsel %vm551_vm4, %v2930_v0, %v2935_v30  ;;  %v1468_v44 = vsel %vm551_vm4, %v2931_v22, %v2936_v29  ;;  %v2941_v45 = vunpack.i.h.bf16 %v3692_v38  ;;  %v2940_v40 = vunpack.i.l.bf16 %v3692_v38  ;;  %2613 = vmatpush1.bf16.msk.msra.mxu1 %vm2612_vm0, %v2611_v31  ;;  %vm3756_vm8 = vmpackc.low %vm4339_vm13, %vm4339_vm13 }
 0x371   : > { %v2602_v42 = vpack.c.bf16 %v1468_v44, %v1467_v43  ;;  %v2944_v49 = vpop.permute.xlu0 %2943  ;;  %2615 = vmatprep.subr.bf16.mxu1 %v3619_v57  ;;  %vm4342_vm0 = vcmp.ge.s32.totalorder %v3324_v2, 1  ;;  %v1809_v2 = vld [vmem:[%s4295_s1 + $0x98] sm:$0xff] }
 0x372   : > { %v1469_v37 = vsel %vm551_vm4, %v2940_v40, %v2930_v0  ;;  %v1470_v20 = vsel %vm551_vm4, %v2941_v45, %v2931_v22  ;;  %v2946_v34 = vunpack.i.h.bf16 %v2944_v49  ;;  %v2945_v50 = vunpack.i.l.bf16 %v2944_v49  ;;  %2601 = vmatpush1.bf16.msra.mxu0 %v3622_v24  ;;  %vm3764_vm2 = vmpackc.low %vm4342_vm0, %vm4342_vm0 }
 0x373   : > { %v2605_v23 = vpack.c.bf16 %v1470_v20, %v1469_v37  ;;  %v3714_v51 = vpop.permute.xlu1 %2948  ;;  %2604 = vmatprep.subr.msk.bf16.mxu0 %vm2603_vm9, %v2602_v42  ;;  %vm2641_vm9 = vmpackc.low %vm510_vm10, %vm510_vm10 }
 0x374   : > { %v1465_v54 = vsel %vm551_vm4, %v2935_v30, %v2945_v50  ;;  %v1466_v46 = vsel %vm551_vm4, %v2936_v29, %v2946_v34  ;;  %v2951_v48 = vunpack.i.h.bf16 %v3714_v51  ;;  %v2950_v57 = vunpack.i.l.bf16 %v3714_v51  ;;  %2617 = vmatpush1.bf16.msra.mxu1 %v3617_v27  ;;  %v1790_v51 = vld [vmem:[%s4295_s1] sm:$0xff] }
 0x375   : > { %v2954_v24 = vpop.permute.xlu0 %2953  ;;  %v2621_v27 = vpack.c.bf16 %v1466_v46, %v1465_v54  ;;  %v1791_v54 = vld [vmem:[%s4295_s1 + $0x8] sm:$0xff] }
 0x376   : > { %v1464_v39 = vsel %vm551_vm4, %v2946_v34, %v2951_v48  ;;  %v1463_v55 = vsel %vm551_vm4, %v2945_v50, %v2950_v57  ;;  %v2956_v59 = vunpack.i.h.bf16 %v2954_v24  ;;  %v2955_v60 = vunpack.i.l.bf16 %v2954_v24  ;;  %2607 = vmatpush1.bf16.msk.msra.mxu0 %vm2606_vm15, %v2605_v23  ;;  %vm2644_vm15 = vmpackc.low %vm509_vm6, %vm509_vm6  ;;  %v1838_v50 = vld [vmem:[%s4295_s1 + $0x180] sm:$0xff]  ;;  %v1831_v34 = vld [vmem:[%s4295_s1 + $0x148] sm:$0xff] }
 0x377   : > { %v2618_v47 = vpack.c.bf16 %v1464_v39, %v1463_v55  ;;  %v2959_v53 = vpop.permute.xlu1 %2958  ;;  %vm4348_vm6 = vcmp.lt.s32.totalorder %v3337_v26, 127  ;;  %v2658_v24 = vpack.c.bf16 %v1791_v54, %v1790_v51  ;;  %v1841_v39 = vld [vmem:[%s4295_s1 + $0x198] sm:$0xff]  ;;  %v2660_v55 = vpack.c.bf16 %v1809_v2, %v1808_v18  ;;  %v1818_v54 = vld [vmem:[%s4295_s1 + $0xe0] sm:$0xff]  ;;  %v1832_v18 = vld [vmem:[%s4295_s1 + $0x150] sm:$0xff] }
 0x378   : > { %v1400_v6 = vsel %vm494_vm1, %v2926_v5, %v2956_v59  ;;  %v1399_v62 = vsel %vm494_vm1, %v2925_v11, %v2955_v60  ;;  %v2961_v63 = vunpack.i.h.bf16 %v2959_v53  ;;  %v2960_v3 = vunpack.i.l.bf16 %v2959_v53  ;;  %vm3826_vm5 = vmpackc.low %vm4348_vm6, %vm4348_vm6  ;;  %v1811_v53 = vld [vmem:[%s4295_s1 + $0xa8] sm:$0xff]  ;;  %v1833_v2 = vld [vmem:[%s4295_s1 + $0x158] sm:$0xff] }
 0x379   : > { %v2964_v7 = vpop.permute.xlu0 %2963  ;;  %2348 = vmatmul.mubr.msk.f32.vlgmr.msra.gmra.mrb[12].mxu0 %vm1494_vm14, %v3735_v61  ;;  %2620 = vmatprep.subr.msk.bf16.mxu1 %vm2619_vm7, %v2618_v47  ;;  %v2627_v5 = vpack.c.bf16 %v1400_v6, %v1399_v62  ;;  %vm2638_vm7 = vmpackc.low %vm564_vm12, %vm564_vm12  ;;  %v1810_v47 = vld [vmem:[%s4295_s1 + $0xa0] sm:$0xff]  ;;  %v1824_v62 = vld [vmem:[%s4295_s1 + $0x110] sm:$0xff] }
 0x37a   : > { %v1398_v28 = vsel %vm494_vm1, %v2956_v59, %v2961_v63  ;;  %v1397_v32 = vsel %vm494_vm1, %v2955_v60, %v2960_v3  ;;  %v2966_v8 = vunpack.i.h.bf16 %v2964_v7  ;;  %v2965_v9 = vunpack.i.l.bf16 %v2964_v7  ;;  %2623 = vmatpush1.bf16.msk.msra.mxu1 %vm2622_vm3, %v2621_v27  ;;  %1704 = vmatprep.mubr.f32.mxu0 %v3049_v14  ;;  %v1792_v59 = vld [vmem:[%s4295_s1 + $0x10] sm:$0xff]  ;;  %v1793_v60 = vld [vmem:[%s4295_s1 + $0x18] sm:$0xff]  ;;  %v1842_v7 = vld [vmem:[%s4295_s1 + $0x1a0] sm:$0xff] }
 0x37b   : > { %v2624_v11 = vpack.c.bf16 %v1398_v28, %v1397_v32  ;;  %v2974_v10 = vpop.permute.xlu1 %2973  ;;  %v1843_v28 = vld [vmem:[%s4295_s1 + $0x1a8] sm:$0xff]  ;;  %v2664_v32 = vpack.c.bf16 %v1811_v53, %v1810_v47  ;;  %v1804_v47 = vld [vmem:[%s4295_s1 + $0x70] sm:$0xff]  ;;  %v1805_v53 = vld [vmem:[%s4295_s1 + $0x78] sm:$0xff] }
 0x37c   : > { %v1394_v4 = vsel %vm494_vm1, %v2966_v8, %v2921_v56  ;;  %v1393_v16 = vsel %vm494_vm1, %v2965_v9, %v2920_v58  ;;  %v1395_v17 = vsel %vm494_vm1, %v2960_v3, %v2965_v9  ;;  %v1396_v19 = vsel %vm494_vm1, %v2961_v63, %v2966_v8  ;;  %v1825_v63 = vld [vmem:[%s4295_s1 + $0x118] sm:$0xff]  ;;  %v1794_v8 = vld [vmem:[%s4295_s1 + $0x20] sm:$0xff]  ;;  %v1795_v9 = vld [vmem:[%s4295_s1 + $0x28] sm:$0xff] }
 0x37d   : > { %v2640_v22 = vpack.c.bf16 %v1394_v4, %v1393_v16  ;;  %v2643_v21 = vpack.c.bf16 %v1396_v19, %v1395_v17  ;;  %v2976_v1 = vunpack.i.h.bf16 %v2974_v10  ;;  %v2975_v0 = vunpack.i.l.bf16 %v2974_v10  ;;  %v2969_v56 = vpop.permute.xlu0 %2968  ;;  %2357 = vmatmul.mubr.msk.f32.vlgmr.msra.gmra.mrb[12].mxu1 %vm1494_vm14, %v3735_v61  ;;  %2626 = vmatprep.subr.msk.bf16.mxu0 %vm3756_vm8, %v2624_v11  ;;  %v1826_v10 = vld [vmem:[%s4295_s1 + $0x120] sm:$0xff]  ;;  %v1844_v16 = vld [vmem:[%s4295_s1 + $0x1b0] sm:$0xff]  ;;  %v1845_v17 = vld [vmem:[%s4295_s1 + $0x1b8] sm:$0xff] }
 0x37e   : > { %v2971_v33 = vunpack.i.h.bf16 %v2969_v56  ;;  %v2970_v58 = vunpack.i.l.bf16 %v2969_v56  ;;  %2629 = vmatpush1.bf16.msk.msra.mxu0 %vm3764_vm2, %v2627_v5  ;;  %1775 = vmatprep.mubr.f32.mxu1 %v3049_v14  ;;  %vm4345_vm1 = vcmp.lt.s32.totalorder %v3318_v15, 127  ;;  %v1806_v14 = vld [vmem:[%s4295_s1 + $0x80] sm:$0xff]  ;;  %v2662_v3 = vpack.c.bf16 %v1793_v60, %v1792_v59  ;;  %v1812_v5 = vld [vmem:[%s4295_s1 + $0xb0] sm:$0xff]  ;;  %v1815_v56 = vld [vmem:[%s4295_s1 + $0xc8] sm:$0xff] }
 0x37f   : > { %v2979_v29 = vpop.permute.xlu1 %2978  ;;  %2631 = vmatprep.subr.bf16.mxu0 %v3638_v35  ;;  %2642 = vmatprep.subr.msk.bf16.mxu1 %vm2641_vm9, %v2640_v22  ;;  %vm3801_vm10 = vmpackc.low %vm4345_vm1, %vm4345_vm1  ;;  %v1807_v35 = vld [vmem:[%s4295_s1 + $0x88] sm:$0xff]  ;;  %v1461_v42 = vsel %vm551_vm4, %v2950_v57, %v2975_v0  ;;  %v1462_v15 = vsel %vm551_vm4, %v2951_v48, %v2976_v1  ;;  %v1822_v48 = vld [vmem:[%s4295_s1 + $0x100] sm:$0xff]  ;;  %v2694_v12 = vpack.c.bf16 %v1825_v63, %v1824_v62 }
 0x380   : > { %v1459_v30 = vsel %vm551_vm4, %v2975_v0, %v2970_v58  ;;  %v1460_v31 = vsel %vm551_vm4, %v2976_v1, %v2971_v33  ;;  %v2981_v43 = vunpack.i.h.bf16 %v2979_v29  ;;  %2645 = vmatpush1.bf16.msk.msra.mxu1 %vm2644_vm15, %v2643_v21  ;;  %v2980_v37 = vunpack.i.l.bf16 %v2979_v29  ;;  %v1796_v22 = vld [vmem:[%s4295_s1 + $0x30] sm:$0xff]  ;;  %v1797_v21 = vld [vmem:[%s4295_s1 + $0x38] sm:$0xff]  ;;  %v1814_v0 = vld [vmem:[%s4295_s1 + $0xc0] sm:$0xff] }
 0x381   : > { %v2634_v49 = vpack.c.bf16 %v1460_v31, %v1459_v30  ;;  %2647 = vmatprep.subr.bf16.mxu1 %v3629_v41  ;;  %v1839_v41 = vld [vmem:[%s4295_s1 + $0x188] sm:$0xff]  ;;  %v2656_v23 = vpack.c.bf16 %v1807_v35, %v1806_v14  ;;  %v2637_v38 = vpack.c.bf16 %v1462_v15, %v1461_v42  ;;  %v2696_v11 = vpack.c.bf16 %v1843_v28, %v1842_v7  ;;  %v1829_v29 = vld [vmem:[%s4295_s1 + $0x138] sm:$0xff]  ;;  %v1846_v31 = vld [vmem:[%s4295_s1 + $0x1c0] sm:$0xff] }
 0x382   : > { %v1472_v20 = vsel %vm551_vm4, %v2981_v43, %v2941_v45  ;;  %2633 = vmatpush1.bf16.msra.mxu0 %v3635_v52  ;;  %v1458_v45 = vsel %vm551_vm4, %v2971_v33, %v2981_v43  ;;  %v1457_v52 = vsel %vm551_vm4, %v2970_v58, %v2980_v37  ;;  %v1471_v26 = vsel %vm551_vm4, %v2980_v37, %v2940_v40  ;;  %v1828_v58 = vld [vmem:[%s4295_s1 + $0x130] sm:$0xff]  ;;  %v1847_v43 = vld [vmem:[%s4295_s1 + $0x1c8] sm:$0xff]  ;;  %v1798_v14 = vld [vmem:[%s4295_s1 + $0x40] sm:$0xff] }
 0x383   : > { %2636 = vmatprep.subr.msk.bf16.mxu0 %vm3801_vm10, %v2634_v49  ;;  %v2650_v46 = vpack.c.bf16 %v1472_v20, %v1471_v26  ;;  %vm4351_vm4 = vcmp.lt.s32.totalorder %v3344_v36, 127  ;;  %v2688_v40 = vpack.c.bf16 %v1839_v41, %v1838_v50  ;;  %v2653_v57 = vpack.c.bf16 %v1458_v45, %v1457_v52  ;;  %v1840_v36 = vld [vmem:[%s4295_s1 + $0x190] sm:$0xff]  ;;  %v1799_v35 = vld [vmem:[%s4295_s1 + $0x48] sm:$0xff]  ;;  %v1817_v49 = vld [vmem:[%s4295_s1 + $0xd8] sm:$0xff] }
 0x384   : > { %2649 = vmatpush1.bf16.msra.mxu1 %v3624_v25  ;;  %vm2654_vm12 = vmpackc.low %vm4351_vm4, %vm4351_vm4  ;;  %v1823_v25 = vld [vmem:[%s4295_s1 + $0x108] sm:$0xff]  ;;  %v2692_v6 = vpack.c.bf16 %v1841_v39, %v1840_v36  ;;  %v2666_v4 = vpack.c.bf16 %v1795_v9, %v1794_v8  ;;  %v2698_v1 = vpack.c.bf16 %v1827_v13, %v1826_v10  ;;  %v2700_v33 = vpack.c.bf16 %v1845_v17, %v1844_v16  ;;  %v1816_v15 = vld [vmem:[%s4295_s1 + $0xd0] sm:$0xff] }
 0x385   : > { %2652 = vmatprep.subr.msk.bf16.mxu1 %vm3826_vm5, %v2650_v46  ;;  %v2690_v27 = vpack.c.bf16 %v1823_v25, %v1822_v48  ;;  %v2670_v30 = vpack.c.bf16 %v1797_v21, %v1796_v22  ;;  %v2672_v44 = vpack.c.bf16 %v1815_v56, %v1814_v0  ;;  %v2702_v42 = vpack.c.bf16 %v1829_v29, %v1828_v58  ;;  %v1830_v20 = vld [vmem:[%s4295_s1 + $0x140] sm:$0xff]  ;;  %v1848_v41 = vld [vmem:[%s4295_s1 + $0x1d0] sm:$0xff]  ;;  %v1849_v45 = vld [vmem:[%s4295_s1 + $0x1d8] sm:$0xff] }
 0x386   : > { %2639 = vmatpush1.bf16.msk.msra.mxu0 %vm2638_vm7, %v2637_v38  ;;  %v2704_v37 = vpack.c.bf16 %v1847_v43, %v1846_v31  ;;  %v2674_v50 = vpack.c.bf16 %v1799_v35, %v1798_v14  ;;  %v2676_v52 = vpack.c.bf16 %v1817_v49, %v1816_v15  ;;  %v1800_v26 = vld [vmem:[%s4295_s1 + $0x50] sm:$0xff]  ;;  %v2706_v51 = vpack.c.bf16 %v1831_v34, %v1830_v20  ;;  %v1819_v38 = vld [vmem:[%s4295_s1 + $0xe8] sm:$0xff]  ;;  %v1802_v25 = vld [vmem:[%s4295_s1 + $0x60] sm:$0xff] }
 0x387   : > { %2657 = vmatprep.subr.bf16.mxu0 %v2656_v23  ;;  %v1801_v23 = vld [vmem:[%s4295_s1 + $0x58] sm:$0xff]  ;;  %v2708_v46 = vpack.c.bf16 %v1849_v45, %v1848_v41  ;;  %v2680_v48 = vpack.c.bf16 %v1819_v38, %v1818_v54  ;;  %v1820_v39 = vld [vmem:[%s4295_s1 + $0xf0] sm:$0xff]  ;;  %v1850_v59 = vld [vmem:[%s4295_s1 + $0x1e0] sm:$0xff]  ;;  %v2686_v62 = vpack.c.bf16 %v1805_v53, %v1804_v47 }
 0x388   : > { %2655 = vmatpush1.bf16.msk.msra.mxu1 %vm2654_vm12, %v2653_v57  ;;  %v1803_v57 = vld [vmem:[%s4295_s1 + $0x68] sm:$0xff]  ;;  %v1834_v63 = vld [vmem:[%s4295_s1 + $0x160] sm:$0xff]  ;;  %v1852_v28 = vld [vmem:[%s4295_s1 + $0x1f0] sm:$0xff] }
 0x389   : > { %2366 = vmatmul.mubr.msk.f32.vlgmr.msra.gmra.mrb[14].mxu0 %vm1494_vm14, %v3735_v61  ;;  %2689 = vmatprep.subr.bf16.mxu1 %v2688_v40  ;;  %v2678_v40 = vpack.c.bf16 %v1801_v23, %v1800_v26  ;;  %v2682_v36 = vpack.c.bf16 %v1803_v57, %v1802_v25  ;;  %v1870_v8 = vld [vmem:[%s4295_s1 + $0x280] sm:$0xff]  ;;  %v1855_v0 = vld [vmem:[%s4295_s1 + $0x208] sm:$0xff]  ;;  %v1873_v58 = vld [vmem:[%s4295_s1 + $0x298] sm:$0xff] }
 0x38a   : > { %2659 = vmatpush3.bf16.msra.mxu0 %v2658_v24  ;;  %v2710_v24 = vpack.c.bf16 %v1833_v2, %v1832_v18  ;;  %v1902_v13 = vld [vmem:[%s4295_s1 + $0x380] sm:$0xff]  ;;  %v1856_v43 = vld [vmem:[%s4295_s1 + $0x210] sm:$0xff]  ;;  %v1905_v45 = vld [vmem:[%s4295_s1 + $0x398] sm:$0xff] }
 0x38b   : > { %2375 = vmatmul.mubr.msk.f32.vlgmr.msra.gmra.mrb[14].mxu1 %vm1494_vm14, %v3735_v61  ;;  %2661 = vmatprep.subr.bf16.mxu0 %v2660_v55  ;;  %v1813_v61 = vld [vmem:[%s4295_s1 + $0xb8] sm:$0xff]  ;;  %v1886_v49 = vld [vmem:[%s4295_s1 + $0x300] sm:$0xff]  ;;  %v1904_v41 = vld [vmem:[%s4295_s1 + $0x390] sm:$0xff]  ;;  %vm2198_vm14 = vcmask 64512  }
 0x38c   : > { %2691 = vmatpush3.bf16.msra.mxu1 %v2690_v27  ;;  %v2668_v19 = vpack.c.bf16 %v1813_v61, %v1812_v5  ;;  %v1821_v55 = vld [vmem:[%s4295_s1 + $0xf8] sm:$0xff]  ;;  %v1851_v27 = vld [vmem:[%s4295_s1 + $0x1e8] sm:$0xff]  ;;  %v1836_v5 = vld [vmem:[%s4295_s1 + $0x170] sm:$0xff]  ;;  %v2756_v18 = vpack.c.bf16 %v1905_v45, %v1904_v41 }
 0x38d   : > { %2693 = vmatprep.subr.bf16.mxu1 %v2692_v6  ;;  %v2684_v60 = vpack.c.bf16 %v1821_v55, %v1820_v39  ;;  %v2712_v6 = vpack.c.bf16 %v1851_v27, %v1850_v59  ;;  %v1837_v61 = vld [vmem:[%s4295_s1 + $0x178] sm:$0xff]  ;;  %v1874_v20 = vld [vmem:[%s4295_s1 + $0x2a0] sm:$0xff]  ;;  %v1859_v54 = vld [vmem:[%s4295_s1 + $0x228] sm:$0xff] }
 0x38e   : > { %2663 = vmatpush3.bf16.msra.mxu0 %v2662_v3  ;;  %v1835_v3 = vld [vmem:[%s4295_s1 + $0x168] sm:$0xff]  ;;  %v2718_v10 = vpack.c.bf16 %v1837_v61, %v1836_v5  ;;  %v4051_v17 = vpop.permute.xlu0 %1491  ;;  %v1888_v2 = vld [vmem:[%s4295_s1 + $0x310] sm:$0xff]  ;;  %v1877_v25 = vld [vmem:[%s4295_s1 + $0x2b8] sm:$0xff] }
 0x38f   : > { %2665 = vmatprep.subr.bf16.mxu0 %v2664_v32  ;;  %v2714_v7 = vpack.c.bf16 %v1835_v3, %v1834_v63  ;;  %v1853_v32 = vld [vmem:[%s4295_s1 + $0x1f8] sm:$0xff]  ;;  %v1906_v57 = vld [vmem:[%s4295_s1 + $0x3a0] sm:$0xff]  ;;  %v1860_v55 = vld [vmem:[%s4295_s1 + $0x230] sm:$0xff] }
 0x390   : > { %2695 = vmatpush3.bf16.msra.mxu1 %v2694_v12  ;;  %v2716_v9 = vpack.c.bf16 %v1853_v32, %v1852_v28  ;;  %v1871_v12 = vld [vmem:[%s4295_s1 + $0x288] sm:$0xff]  ;;  %v1861_v59 = vld [vmem:[%s4295_s1 + $0x238] sm:$0xff]  ;;  %v1890_v47 = vld [vmem:[%s4295_s1 + $0x320] sm:$0xff] }
 0x391   : > { %2697 = vmatprep.subr.bf16.mxu1 %v2696_v11  ;;  %v2720_v11 = vpack.c.bf16 %v1871_v12, %v1870_v8  ;;  %v1891_v53 = vld [vmem:[%s4295_s1 + $0x328] sm:$0xff]  ;;  %v1908_v63 = vld [vmem:[%s4295_s1 + $0x3b0] sm:$0xff]  ;;  %v1909_v3 = vld [vmem:[%s4295_s1 + $0x3b8] sm:$0xff]  ;;  %v2734_v28 = vpack.c.bf16 %v1861_v59, %v1860_v55 }
 0x392   : > { %2667 = vmatpush3.bf16.msra.mxu0 %v2666_v4  ;;  %v1903_v4 = vld [vmem:[%s4295_s1 + $0x388] sm:$0xff]  ;;  %v2762_v32 = vpack.c.bf16 %v1891_v53, %v1890_v47  ;;  %v1862_v8 = vld [vmem:[%s4295_s1 + $0x240] sm:$0xff]  ;;  %v2764_v5 = vpack.c.bf16 %v1909_v3, %v1908_v63  ;;  %v1917_v55 = vld [vmem:[%s4295_s1 + $0x3f8] sm:$0xff] }
 0x393   : > { %2669 = vmatprep.subr.bf16.mxu0 %v2668_v19  ;;  %v2752_v16 = vpack.c.bf16 %v1903_v4, %v1902_v13  ;;  %v1863_v61 = vld [vmem:[%s4295_s1 + $0x248] sm:$0xff]  ;;  %v1900_v53 = vld [vmem:[%s4295_s1 + $0x370] sm:$0xff] }
 0x394   : > { %2699 = vmatpush3.bf16.msra.mxu1 %v2698_v1  ;;  %v1854_v1 = vld [vmem:[%s4295_s1 + $0x200] sm:$0xff]  ;;  %v1867_v41 = vld [vmem:[%s4295_s1 + $0x268] sm:$0xff] }
 0x395   : > { %2701 = vmatprep.subr.bf16.mxu1 %v2700_v33  ;;  %v1872_v33 = vld [vmem:[%s4295_s1 + $0x290] sm:$0xff]  ;;  %v2722_v31 = vpack.c.bf16 %v1855_v0, %v1854_v1  ;;  %v1911_v1 = vld [vmem:[%s4295_s1 + $0x3c8] sm:$0xff] }
 0x396   : > { %2671 = vmatpush3.bf16.msra.mxu0 %v2670_v30  ;;  %v2724_v15 = vpack.c.bf16 %v1873_v58, %v1872_v33  ;;  %v2738_v33 = vpack.c.bf16 %v1863_v61, %v1862_v8 }
 0x397   : > { %2673 = vmatprep.subr.bf16.mxu0 %v2672_v44  ;;  %v1857_v44 = vld [vmem:[%s4295_s1 + $0x218] sm:$0xff] }
 0x398   : > { %2703 = vmatpush3.bf16.msra.mxu1 %v2702_v42  ;;  %v2726_v26 = vpack.c.bf16 %v1857_v44, %v1856_v43  ;;  %v1894_v43 = vld [vmem:[%s4295_s1 + $0x340] sm:$0xff]  ;;  %v1895_v44 = vld [vmem:[%s4295_s1 + $0x348] sm:$0xff] }
 0x399   : > { %2705 = vmatprep.subr.bf16.mxu1 %v2704_v37  ;;  %v1887_v37 = vld [vmem:[%s4295_s1 + $0x308] sm:$0xff] }
 0x39a   : > { %2675 = vmatpush3.bf16.msra.mxu0 %v2674_v50  ;;  %v1875_v50 = vld [vmem:[%s4295_s1 + $0x2a8] sm:$0xff]  ;;  %v2754_v23 = vpack.c.bf16 %v1887_v37, %v1886_v49  ;;  %v1912_v49 = vld [vmem:[%s4295_s1 + $0x3d0] sm:$0xff]  ;;  %v1913_v37 = vld [vmem:[%s4295_s1 + $0x3d8] sm:$0xff] }
 0x39b   : > { %2677 = vmatprep.subr.bf16.mxu0 %v2676_v52 }
 0x39c   : > { %2707 = vmatpush3.bf16.msra.mxu1 %v2706_v51  ;;  %v1858_v51 = vld [vmem:[%s4295_s1 + $0x220] sm:$0xff] }
 0x39d   : > { %2709 = vmatprep.subr.bf16.mxu1 %v2708_v46  ;;  %v2728_v46 = vpack.c.bf16 %v1875_v50, %v1874_v20  ;;  %v1866_v50 = vld [vmem:[%s4295_s1 + $0x260] sm:$0xff] }
 0x39e   : > { %2679 = vmatpush3.bf16.msra.mxu0 %v2678_v40  ;;  %v1889_v40 = vld [vmem:[%s4295_s1 + $0x318] sm:$0xff] }
 0x39f   : > { %2681 = vmatprep.subr.bf16.mxu0 %v2680_v48  ;;  %v1876_v48 = vld [vmem:[%s4295_s1 + $0x2b0] sm:$0xff]  ;;  %v2758_v39 = vpack.c.bf16 %v1889_v40, %v1888_v2 }
 0x3a0   : > { %2711 = vmatpush3.bf16.msra.mxu1 %v2710_v24  ;;  %v1907_v24 = vld [vmem:[%s4295_s1 + $0x3a8] sm:$0xff]  ;;  %v1868_v40 = vld [vmem:[%s4295_s1 + $0x270] sm:$0xff] }
 0x3a1   : > { %2713 = vmatprep.subr.bf16.mxu1 %v2712_v6  ;;  %v2760_v27 = vpack.c.bf16 %v1907_v24, %v1906_v57  ;;  %v1878_v6 = vld [vmem:[%s4295_s1 + $0x2c0] sm:$0xff]  ;;  %v1869_v57 = vld [vmem:[%s4295_s1 + $0x278] sm:$0xff] }
 0x3a2   : > { %2683 = vmatpush3.bf16.msra.mxu0 %v2682_v36  ;;  %v2730_v36 = vpack.c.bf16 %v1859_v54, %v1858_v51  ;;  %v1884_v51 = vld [vmem:[%s4295_s1 + $0x2f0] sm:$0xff]  ;;  %v1885_v54 = vld [vmem:[%s4295_s1 + $0x2f8] sm:$0xff]  ;;  %v1898_v24 = vld [vmem:[%s4295_s1 + $0x360] sm:$0xff]  ;;  %v2750_v59 = vpack.c.bf16 %v1869_v57, %v1868_v40 }
 0x3a3   : > { %2685 = vmatprep.subr.bf16.mxu0 %v2684_v60  ;;  %v2732_v60 = vpack.c.bf16 %v1877_v25, %v1876_v48  ;;  %v2748_v48 = vpack.c.bf16 %v1885_v54, %v1884_v51 }
 0x3a4   : > { %2715 = vmatpush3.bf16.msra.mxu1 %v2714_v7 }
 0x3a5   : > { %2717 = vmatprep.subr.bf16.mxu1 %v2716_v9 }
 0x3a6   : > { %2687 = vmatpush3.bf16.msra.mxu0 %v2686_v62  ;;  %v1879_v62 = vld [vmem:[%s4295_s1 + $0x2c8] sm:$0xff] }
 0x3a7   : > { %2721 = vmatprep.subr.bf16.mxu0 %v2720_v11  ;;  %v2736_v12 = vpack.c.bf16 %v1879_v62, %v1878_v6  ;;  %v1892_v11 = vld [vmem:[%s4295_s1 + $0x330] sm:$0xff]  ;;  %v1901_v6 = vld [vmem:[%s4295_s1 + $0x378] sm:$0xff] }
 0x3a8   : > { %2719 = vmatpush3.bf16.msra.mxu1 %v2718_v10  ;;  %v1893_v10 = vld [vmem:[%s4295_s1 + $0x338] sm:$0xff]  ;;  %v2782_v62 = vpack.c.bf16 %v1901_v6, %v1900_v53 }
 0x3a9   : > { %2753 = vmatprep.subr.bf16.mxu1 %v2752_v16  ;;  %v1880_v16 = vld [vmem:[%s4295_s1 + $0x2d0] sm:$0xff]  ;;  %v2766_v58 = vpack.c.bf16 %v1893_v10, %v1892_v11 }
 0x44c   : > { %v1564_v19 = vpop.f32.mrb[12].mxu0 }
 0x44d   : > { %v1565_v22 = vadd.f32 %v1564_v19, %v4051_v17  ;;  %v1566_v21 = vpop.f32.mrb[13].mxu0  ;;  %v1881_v19 = vld [vmem:[%s4295_s1 + $0x2d8] sm:$0xff] }
 0x44e   : > { %v1567_v56 = vadd.f32 %v1566_v21, %v4051_v17  ;;  %v1910_v21 = vld [vmem:[%s4295_s1 + $0x3c0] sm:$0xff] }
 0x44f   : > { %v1782_v14 = vmax.f32 %v1565_v22, 0.0 }
 0x450   : > { %v1783_v29 = vmax.f32 %v1567_v56, 0.0  ;;  %v1635_v30 = vpop.f32.mrb[12].mxu1 }
 0x451   : > { %v1636_v35 = vadd.f32 %v1635_v30, %v4051_v17  ;;  %v1637_v42 = vpop.f32.mrb[13].mxu1  ;;  %v1865_v30 = vld [vmem:[%s4295_s1 + $0x258] sm:$0xff] }
 0x452   : > { %v1638_v34 = vadd.f32 %v1637_v42, %v4051_v17  ;;  %1982 = vmatprep.mubr.f32.mxu0 %v1783_v29  ;;  %v1864_v29 = vld [vmem:[%s4295_s1 + $0x250] sm:$0xff]  ;;  %v2768_v42 = vpack.c.bf16 %v1911_v1, %v1910_v21 }
 0x453   : > { %1983 = vmatmul.mubr.f32.vlgmr.msra.gmra.mrb[16].mxu0 %v1782_v14  ;;  %v1784_v38 = vmax.f32 %v1636_v35, 0.0  ;;  %v1882_v14 = vld [vmem:[%s4295_s1 + $0x2e0] sm:$0xff]  ;;  %v2742_v20 = vpack.c.bf16 %v1865_v30, %v1864_v29 }
 0x454   : > { %v1785_v52 = vmax.f32 %v1638_v34, 0.0  ;;  %2723 = vmatpush3.bf16.msra.mxu0 %v2722_v31  ;;  %v2740_v31 = vpack.c.bf16 %v1881_v19, %v1880_v16  ;;  %v2770_v34 = vpack.c.bf16 %v1895_v44, %v1894_v43 }
 0x455   : > { %2725 = vmatprep.subr.bf16.mxu0 %v2724_v15  ;;  %v1883_v15 = vld [vmem:[%s4295_s1 + $0x2e8] sm:$0xff] }
 0x456   : > { %2052 = vmatprep.mubr.f32.mxu1 %v1785_v52  ;;  %v2744_v45 = vpack.c.bf16 %v1883_v15, %v1882_v14  ;;  %v2772_v52 = vpack.c.bf16 %v1913_v37, %v1912_v49 }
 0x457   : > { %2053 = vmatmul.mubr.f32.vlgmr.msra.gmra.mrb[16].mxu1 %v1784_v38  ;;  %v1914_v38 = vld [vmem:[%s4295_s1 + $0x3e0] sm:$0xff] }
 0x458   : > { %2727 = vmatpush3.bf16.msra.mxu0 %v2726_v26  ;;  %2755 = vmatpush3.bf16.msra.mxu1 %v2754_v23  ;;  %v1896_v26 = vld [vmem:[%s4295_s1 + $0x350] sm:$0xff]  ;;  %v1897_v23 = vld [vmem:[%s4295_s1 + $0x358] sm:$0xff] }
 0x459   : > { %2729 = vmatprep.subr.bf16.mxu0 %v2728_v46  ;;  %2757 = vmatprep.subr.bf16.mxu1 %v2756_v18  ;;  %v1915_v46 = vld [vmem:[%s4295_s1 + $0x3e8] sm:$0xff]  ;;  %v2746_v18 = vpack.c.bf16 %v1867_v41, %v1866_v50  ;;  %v2774_v2 = vpack.c.bf16 %v1897_v23, %v1896_v26 }
 0x45a   : > { %v2776_v25 = vpack.c.bf16 %v1915_v46, %v1914_v38 }
 0x45c   : > { %2731 = vmatpush3.bf16.msra.mxu0 %v2730_v36  ;;  %2759 = vmatpush3.bf16.msra.mxu1 %v2758_v39  ;;  %v4141_v7 = vpop.f32.mrb[14].mxu0  ;;  %v1899_v36 = vld [vmem:[%s4295_s1 + $0x368] sm:$0xff]  ;;  %v1916_v39 = vld [vmem:[%s4295_s1 + $0x3f0] sm:$0xff] }
 0x45d   : > { %v1708_v9 = vpop.f32.mrb[15].mxu0  ;;  %2733 = vmatprep.subr.bf16.mxu0 %v2732_v60  ;;  %2761 = vmatprep.subr.bf16.mxu1 %v2760_v27  ;;  %v2778_v60 = vpack.c.bf16 %v1899_v36, %v1898_v24  ;;  %v1707_v27 = vadd.f32 %v4141_v7, %v4051_v17  ;;  %v2780_v47 = vpack.c.bf16 %v1917_v55, %v1916_v39 }
 0x45e   : > { %v1709_v13 = vadd.f32 %v1708_v9, %v4051_v17  ;;  %v4156_v4 = vpop.f32.mrb[14].mxu1 }
 0x45f   : > { %v1779_v22 = vpop.f32.mrb[15].mxu1  ;;  %v1786_v63 = vmax.f32 %v1707_v27, 0.0  ;;  %v1778_v3 = vadd.f32 %v4156_v4, %v4051_v17 }
 0x460   : > { %v1787_v0 = vmax.f32 %v1709_v13, 0.0  ;;  %v1780_v56 = vadd.f32 %v1779_v22, %v4051_v17  ;;  %2735 = vmatpush3.bf16.msra.mxu0 %v2734_v28  ;;  %2763 = vmatpush3.bf16.msra.mxu1 %v2762_v32 }
 0x461   : > { %2737 = vmatprep.subr.bf16.mxu0 %v2736_v12  ;;  %2765 = vmatprep.subr.bf16.mxu1 %v2764_v5  ;;  %v1788_v7 = vmax.f32 %v1778_v3, 0.0 }
 0x462   : > { %v1789_v35 = vmax.f32 %v1780_v56, 0.0  ;;  %2122 = vmatprep.mubr.f32.mxu0 %v1787_v0 }
 0x464   : > { %2739 = vmatpush3.bf16.msra.mxu0 %v2738_v33  ;;  %2767 = vmatpush3.bf16.msra.mxu1 %v2766_v58 }
 0x465   : > { %2192 = vmatprep.mubr.f32.mxu1 %v1789_v35  ;;  %2741 = vmatprep.subr.bf16.mxu0 %v2740_v31 }
 0x466   : > { %2769 = vmatprep.subr.bf16.mxu1 %v2768_v42 }
 0x468   : > { %2743 = vmatpush3.bf16.msra.mxu0 %v2742_v20  ;;  %2771 = vmatpush3.bf16.msra.mxu1 %v2770_v34 }
 0x469   : > { %2745 = vmatprep.subr.bf16.mxu0 %v2744_v45  ;;  %2773 = vmatprep.subr.bf16.mxu1 %v2772_v52 }
 0x46c   : > { %2747 = vmatpush3.bf16.msra.mxu0 %v2746_v18  ;;  %2775 = vmatpush3.bf16.msra.mxu1 %v2774_v2 }
 0x46d   : > { %2749 = vmatprep.subr.bf16.mxu0 %v2748_v48  ;;  %2777 = vmatprep.subr.bf16.mxu1 %v2776_v25 }
 0x470   : > { %2751 = vmatpush3.bf16.msra.mxu0 %v2750_v59  ;;  %2779 = vmatpush3.bf16.msra.mxu1 %v2778_v60 }
 0x471   : > { %2781 = vmatprep.subr.bf16.mxu1 %v2780_v47 }
 0x473   : > { %2123 = vmatmul.mubr.f32.vlgmr.msra.gmra.mrb[18].mxu0 %v1786_v63 }
 0x474   : > { %2783 = vmatpush3.bf16.msra.mxu1 %v2782_v62 }
 0x477   : > { %2193 = vmatmul.mubr.f32.vlgmr.msra.gmra.mrb[18].mxu1 %v1788_v7 }
 0x526   : > { %v2412_v28 = vpop.f32.mrb[16].mxu0 }
 0x527   : > { %v2413_v32 = vpop.f32.mrb[17].mxu0 }
 0x528   : > { %v2414_v8 = vadd.f32 %v2413_v32, %v2412_v28 }
 0x52a   : > { %v2447_v9 = vpop.f32.mrb[16].mxu1 }
 0x52b   : > { %v2448_v12 = vpop.f32.mrb[17].mxu1 }
 0x52c   : > { %v2449_v5 = vadd.f32 %v2448_v12, %v2447_v9 }
 0x52e   : > { %v2055_v61 = vadd.f32 %v2449_v5, %v2414_v8 }
 0x546   : > { %v2482_v11 = vpop.f32.mrb[18].mxu0 }
 0x547   : > { %v2483_v10 = vpop.f32.mrb[19].mxu0 }
 0x548   : > { %v2484_v13 = vadd.f32 %v2483_v10, %v2482_v11 }
 0x54a   : > { %v2125_v17 = vadd.f32 %v2484_v13, %v2055_v61  ;;  %v2517_v4 = vpop.f32.mrb[18].mxu1 }
 0x54b   : > { %v2518_v16 = vpop.f32.mrb[19].mxu1 }
 0x54c   : > { %v2519_v19 = vadd.f32 %v2518_v16, %v2517_v4 }
 0x54e   : > { %v2195_v22 = vadd.f32 %v2519_v19, %v2125_v17 }
 0x550   : > { %2199 = vst.msk [vmem:[%s299_s24] sm:$0xff] %vm2198_vm14, %v2195_v22 }
 0x551   : > { %2995 = shalt.err (!%p2992_p3)
}
 0x552   : > { %s2996_s26 = scalar_lea.hbm %s4252_s19, 128  ;;  %s3000_s23 = scalar_lea.hbm %s4302_s8, 256 }
 0x553   : > { %p2997_p4 = scmp.ne.s32.totalorder %s4252_s19, %s2996_s26  ;;  %p3001_p9 = scmp.lt.u32.totalorder %s4252_s19, %s4302_s8 }
 0x554   : > { %p3002_p10 = scmp.lt.u32.totalorder %s3000_s23, %s2996_s26  ;;  %p3004_p12 = scmp.lt.u32.totalorder %s2996_s26, %s4252_s19 }
 0x555   : > { %p2998_p7 = pnand %p2997_p4, %p3137_p5 }
 0x556   : > { %p3003_p11 = por %p3002_p10, %p3001_p9 }
 0x557   : > { %p2999_p8 = pneg %p2998_p7 }
 0x558   : > { %p3005_p13 = por %p3004_p12, %p3003_p11 }
 0x55a   : > { %p3006_p0 = pnand %p3005_p13, %p2999_p8 }
 0x55c   : > { %3009 = shalt.err (!%p3006_p0)
}
 0x55d   : > { %2784 = dma.vmem_to_hbm [thread:$0]  (%p3137_p5), %s4254_s13, 128, %s4252_s19, %s2201_s20  }
 0x55e PF: > { %p2790_p1 = scmp.ge.s32.totalorder %s3044_s30, 2  ;;  %s2226_s18 = sand.u32 1, %s3032_s27  }
 0x55f   : > { %s2227_s21 = scalar_lea.sflag [#allocation3], %s2226_s18 }
 0x560   : > { %p2787_p2 = pnand %p2790_p1, %p3141_p6 }
 0x562   : > { %3027 = dma.done.wait (!%p2787_p2), %s2227_s21, 128  }
 0x563   : > { %3029 = vsyncadd (!%p2787_p2), %s2227_s21, 4294967168  ;;  %p18_p3 = scmp.ge.s32.totalorder %s3124_s11, 4   ;;  %s4352_s27 = smov %s3036_s28 }
 0x564   : > { %s4353_s28 = smov %s3040_s29  ;;  %s4354_s29 = smov %s3135_s14 }
 0x565   : > { %s4355_s30 = smov %s3124_s11  ;;  %20 = sbr.rel (!%p18_p3) target bundleno = 3 (0x3), region = 87 }
 0x56c   :  { %2232 = vsyncpa [#allocation3], 1 }
 0x56d   :  { %2234 = vsyncpa [#allocation3 + $0x1], 1 }

</bundles_post_ra>
